<compile_context>
chip_gen: v7x
topology: tpu7x:2x2x1
jax: 0.10.0
libtpu: 0.0.40
codegen_flags: <defaults>
</compile_context>

<pallas_src>
import math
from functools import partial

import jax
import jax.numpy as jnp
from jax import lax
from jax.experimental import pallas as pl
from jax.experimental.pallas import tpu as pltpu

_LANE = 128
_F32 = 4
_PIPELINE_BUDGET = 16 * 1024 * 1024   # target bytes for the double-buffered blocks


def _round_up(x, m):
    return ((x + m - 1) // m) * m


def _vmem_limit(buffer_bytes):
    total = int(buffer_bytes) + (4 << 20)          # slack for Mosaic internal scratch
    return int(min(98 << 20, max(total, 16 << 20)))


def _row_tile(n_rows, per_row_bytes):
    """Largest multiple-of-128 row tile whose double-buffered footprint fits the
    budget, capped so big problems still get ~8 grid steps (pipelining +
    megacore)."""
    tile = _PIPELINE_BUDGET // max(1, 2 * per_row_bytes)
    tile = max(_LANE, (tile // _LANE) * _LANE)
    tile = min(tile, max(_LANE, _round_up(pl.cdiv(n_rows, 8), _LANE)))
    return tile


# ---------------------------------------------------------------------------
# Kernels
# ---------------------------------------------------------------------------

def _semble_packed_kernel(x_ref, m_ref, b_ref, out_ref, *, precision):
    """Single pass: one MXU matmul does the weight-mul and the segmented
    feature reduction.  x_ref: (TP, L), m_ref: (L, G), b_ref: (1,) SMEM,
    out_ref: (TP, G) f32 (small vs. the streamed input tile)."""
    acc = jnp.dot(x_ref[...], m_ref[...],
                  preferred_element_type=jnp.float32, precision=precision)
    out_ref[...] = acc + b_ref[0]


def _semble_kaxis_kernel(x_ref, m_ref, b_ref, out_ref, acc_ref, *,
                         s_total, tk, precision):
    """Large-S path: stream the feature axis over grid axis 1, accumulate in an
    f32 VMEM scratch.  x_ref: (TR, TK), m_ref: (TK, 1), out/acc: (TR, 1)."""
    k = pl.program_id(1)

    @pl.when(k == 0)
    def _init():
        acc_ref[...] = jnp.zeros_like(acc_ref)

    x = x_ref[...]
    # The last feature chunk may read out-of-bounds columns (unspecified data);
    # zero them (the corresponding weight rows are zero-padded as well).
    col = lax.broadcasted_iota(jnp.int32, x.shape, 1) + k * tk
    x = jnp.where(col < s_total, x, jnp.zeros_like(x))

    acc_ref[...] += jnp.dot(x, m_ref[...],
                            preferred_element_type=jnp.float32,
                            precision=precision)

    @pl.when(k == pl.num_programs(1) - 1)
    def _emit():
        out_ref[...] = acc_ref[...] + b_ref[0]


# ---------------------------------------------------------------------------
# Wrapper
# ---------------------------------------------------------------------------

def semble_forward(data, weight, bias, *, feature_block=4096):
    """data: (B, N, S), weight: (1, S), bias: (1,)  ->  logits (B, N) float32."""
    B, N, S = data.shape
    R = B * N
    elem = jnp.dtype(data.dtype).itemsize
    precision = (lax.Precision.HIGHEST if data.dtype == jnp.float32
                 else lax.Precision.DEFAULT)

    bias_smem = bias.reshape(1).astype(jnp.float32)
    w_col = weight.reshape(S, 1).astype(data.dtype)

    cost = pl.CostEstimate(
        flops=2 * R * S,
        bytes_accessed=R * S * elem + R * _F32 + S * elem,
        transcendentals=0,
    )

    if S <= feature_block:
        # ----- single-pass path (lane-packed when S divides 128) -----
        if S < _LANE and _LANE % S == 0:
            g = math.gcd(R, 2 * (_LANE // S))   # pack up to 2*128 lanes per row
        else:
            g = 1
        L = g * S
        rp = R // g
        packed = data.reshape(rp, L)            # pure row-major reshape, no copy

        # Block-diagonal weight: m[gi*S + s, gi] = w[s].  (TP, L) @ (L, g) does
        # the per-row weighted sums for all g rows packed into one lane-dense row.
        m = jnp.kron(jnp.eye(g, dtype=data.dtype), w_col)

        in_row = _round_up(L, _LANE) * elem              # lane-padded data row
        out_row = _round_up(g, _LANE) * _F32             # lane-padded f32 out row
        tile = _row_tile(rp, in_row + out_row)
        n_tiles = pl.cdiv(rp, tile)
        m_bytes = _round_up(L, 8) * _round_up(g, _LANE) * elem
        limit = _vmem_limit(2 * tile * (in_row + out_row) + 2 * m_bytes)

        out2d = pl.pallas_call(
            partial(_semble_packed_kernel, precision=precision),
            out_shape=jax.ShapeDtypeStruct((rp, g), jnp.float32),
            grid=(n_tiles,),
            in_specs=[
                # Streamed data tiles: auto-pipelined, double buffered.
                pl.BlockSpec((tile, L), lambda i: (i, 0)),
                # Weight matrix: constant index -> fetched once, stays resident.
                pl.BlockSpec((L, g), lambda i: (0, 0)),
                # Scalar bias in SMEM.
                pl.BlockSpec(memory_space=pltpu.MemorySpace.SMEM),
            ],
            out_specs=pl.BlockSpec((tile, g), lambda i: (i, 0)),
            compiler_params=pltpu.CompilerParams(
                dimension_semantics=("parallel",),
                vmem_limit_bytes=limit,
            ),
            cost_estimate=cost,
        )(packed, m, bias_smem)
        # out2d[p, gi] is the logit of flat row p*g + gi -> row-major flatten.
        return out2d.reshape(B, N)

    # ----- large-S path: stream features over an "arbitrary" reduction axis -----
    tk = 512
    n_k = pl.cdiv(S, tk)
    m = w_col
    if n_k * tk != S:
        # Pad only the tiny (S, 1) weight so the feature tail contributes zero.
        m = jnp.pad(m, ((0, n_k * tk - S), (0, 0)))

    in_row = tk * elem
    out_row = _round_up(1, _LANE) * _F32
    acc_row = out_row
    tile = _row_tile(R, in_row + out_row)
    n_row_tiles = pl.cdiv(R, tile)
    limit = _vmem_limit(2 * tile * (in_row + out_row) + tile * acc_row
                        + 2 * tk * _LANE * elem)

    out2d = pl.pallas_call(
        partial(_semble_kaxis_kernel, s_total=S, tk=tk, precision=precision),
        out_shape=jax.ShapeDtypeStruct((R, 1), jnp.float32),
        grid=(n_row_tiles, n_k),
        in_specs=[
            pl.BlockSpec((tile, tk), lambda i, k: (i, k)),
            pl.BlockSpec((tk, 1), lambda i, k: (k, 0)),
            pl.BlockSpec(memory_space=pltpu.MemorySpace.SMEM),
        ],
        out_specs=pl.BlockSpec((tile, 1), lambda i, k: (i, 0)),
        scratch_shapes=[pltpu.VMEM((tile, 1), jnp.float32)],
        compiler_params=pltpu.CompilerParams(
            dimension_semantics=("parallel", "arbitrary"),
            vmem_limit_bytes=limit,
        ),
        cost_estimate=cost,
    )(data.reshape(R, S), m, bias_smem)
    return out2d.reshape(B, N)


if __name__ == "__main__":
    key = jax.random.PRNGKey(0)
    k1, k2, k3, k4 = jax.random.split(key, 4)

    # Case 1: module-sized shapes (batch=2, members=8, size=32) -> packed path.
    B, N, S = 2, 8, 32
    data = jax.random.normal(k1, (B, N, S), dtype=jnp.float32)
    weight = 0.03 * jax.random.normal(k2, (1, S), dtype=jnp.float32)  # normal_(0, 0.03)
    bias = jnp.zeros((1,), dtype=jnp.float32)                          # bias.fill_(0)

    logits = jax.block_until_ready(semble_forward(data, weight, bias))
    ref = jnp.sum(weight[jnp.newaxis, :, :] * data, axis=2) + bias
    assert logits.shape == (B, N)
    assert jnp.allclose(logits, ref, atol=1e-5, rtol=1e-5), "packed path mismatch"

    # Case 2: larger feature count forced onto the streamed feature-reduction
    # path (S not a multiple of the 512 chunk -> exercises the tail masking).
    B2, N2, S2 = 2, 4, 800
    data2 = jax.random.normal(k3, (B2, N2, S2), dtype=jnp.float32)
    weight2 = 0.03 * jax.random.normal(k4, (1, S2), dtype=jnp.float32)
    bias2 = jnp.full((1,), 0.25, dtype=jnp.float32)
    logits2 = jax.block_until_ready(
        semble_forward(data2, weight2, bias2, feature_block=256))
    ref2 = jnp.sum(weight2[jnp.newaxis, :, :] * data2, axis=2) + bias2
    assert jnp.allclose(logits2, ref2, atol=1e-4, rtol=1e-4), "k-axis path mismatch"

    print("KERNEL_OK")
</pallas_src>

<mosaic_0001>
module attributes {stable_mosaic.version = 11 : i64} {
  func.func @_semble_packed_kernel(%arg0: i32, %arg1: memref<128x256xf32, #tpu.memory_space<vmem>>, %arg2: memref<256x8xf32, #tpu.memory_space<vmem>>, %arg3: memref<1xf32, #tpu.memory_space<smem>>, %arg4: memref<128x8xf32, #tpu.memory_space<vmem>>) attributes {dimension_semantics = [#tpu.dimension_semantics<parallel>], iteration_bounds = array<i64: 1>, scalar_prefetch = 0 : i64, scratch_operands = 0 : i64, tpu.core_type = #tpu.core_type<tc>, window_params = [{transform_indices = @transform_0, window_bounds = array<i64: 128, 256>}, {pipeline_mode = #tpu.pipeline_mode<synchronous>, transform_indices = @transform_1, window_bounds = array<i64: 256, 8>}, {transform_indices = @transform_2, window_bounds = array<i64: 1>}, {transform_indices = @transform_3, window_bounds = array<i64: 128, 8>}]} {
    %c0 = arith.constant 0 : index
    %c0_0 = arith.constant 0 : index
    %0 = vector.load %arg1[%c0, %c0_0] : memref<128x256xf32, #tpu.memory_space<vmem>>, vector<128x256xf32>
    %c0_1 = arith.constant 0 : index
    %c0_2 = arith.constant 0 : index
    %1 = vector.load %arg2[%c0_1, %c0_2] : memref<256x8xf32, #tpu.memory_space<vmem>>, vector<256x8xf32>
    %cst = arith.constant dense<0.000000e+00> : vector<128x8xf32>
    %2 = tpu.matmul %0, %1, %cst {dimension_numbers = #tpu.dot_dimension_numbers<[1], [0], [0], [1], [0, 0, 1, 1], [], []>, precision = #tpu.contract_precision<fp32>} : vector<128x256xf32>, vector<256x8xf32>, vector<128x8xf32> -> vector<128x8xf32>
    %c0_3 = arith.constant 0 : index
    %3 = memref.load %arg3[%c0_3] : memref<1xf32, #tpu.memory_space<smem>>
    %4 = vector.broadcast %3 : f32 to vector<128x8xf32>
    %5 = arith.addf %2, %4 : vector<128x8xf32>
    %c0_4 = arith.constant 0 : index
    %c0_5 = arith.constant 0 : index
    %6 = vector.load %arg4[%c0_4, %c0_5] : memref<128x8xf32, #tpu.memory_space<vmem>>, vector<128x8xf32>
    tpu.vector_store %arg4[%c0_4, %c0_5], %5 {strides = array<i32>} : memref<128x8xf32, #tpu.memory_space<vmem>>, vector<128x8xf32>,
    return
  }
  func.func @transform_0(%arg0: i32) -> (i32, i32) {
    %c0_i32 = arith.constant 0 : i32
    %c0_i32_0 = arith.constant 0 : i32
    return %arg0, %c0_i32 : i32, i32
  }
  func.func @transform_1(%arg0: i32) -> (i32, i32) {
    %c0_i32 = arith.constant 0 : i32
    %c0_i32_0 = arith.constant 0 : i32
    %c0_i32_1 = arith.constant 0 : i32
    return %c0_i32, %c0_i32_0 : i32, i32
  }
  func.func @transform_2(%arg0: i32) -> i32 {
    %c0_i32 = arith.constant 0 : i32
    %c0_i32_0 = arith.constant 0 : i32
    return %c0_i32 : i32
  }
  func.func @transform_3(%arg0: i32) -> (i32, i32) {
    %c0_i32 = arith.constant 0 : i32
    %c0_i32_0 = arith.constant 0 : i32
    return %arg0, %c0_i32 : i32, i32
  }
}

</mosaic_0001>

<bundles_post_ra>
// kernel: tpu_custom_call.1
= control target key start
LH: loop header
LB: loop body
LE: loop exit
PB: predicated region body
PF: predicated region fallthrough
CT: control target
= control target key end

     0   :  { %9 = vsyncpa [#allocation4], 0  ;;  %vm2200_vm0 = vcmask 64512   ;;  %s4208_s0 = inlined_call_operand.vmem [shape: f32[2,256], index: 0, kind: input, shape index: {}]   ;;  %s4209_s1 = inlined_call_operand.vmem [shape: f32[256,8], index: 1, kind: input, shape index: {}]   ;;  %s4210_s2 = inlined_call_operand.<no memory space> [shape: f32[1], index: 2, kind: input, shape index: {}]   ;;  %s4211_s3 = inlined_call_operand.hbm [shape: f32[2,8], index: 3, kind: output, shape index: {}]  }
   0x1   :  { %v96_v0 = vld [vmem:[%s4209_s1 + $0x80] sm:$0xff]  ;;  %v97_v1 = vld [vmem:[%s4209_s1 + $0x88] sm:$0xff]  ;;  %v98_v6 = vld [vmem:[%s4209_s1 + $0x90] sm:$0xff] }
   0x2   :  { %v547_v2 = vand.u32 4294901760, %v96_v0  ;;  %v550_v3 = vand.u32 4294901760, %v97_v1  ;;  %v80_v4 = vld [vmem:[%s4209_s1] sm:$0xff]  ;;  %v81_v5 = vld [vmem:[%s4209_s1 + $0x8] sm:$0xff]  ;;  %v99_v9 = vld [vmem:[%s4209_s1 + $0x98] sm:$0xff]  ;;  %v553_v10 = vand.u32 4294901760, %v98_v6 }
   0x3   :  { %v499_v7 = vand.u32 4294901760, %v80_v4  ;;  %v502_v8 = vand.u32 4294901760, %v81_v5  ;;  %v82_v11 = vld [vmem:[%s4209_s1 + $0x10] sm:$0xff]  ;;  %v83_v12 = vld [vmem:[%s4209_s1 + $0x18] sm:$0xff]  ;;  %v556_v14 = vand.u32 4294901760, %v99_v9  ;;  %v100_v17 = vld [vmem:[%s4209_s1 + $0xa0] sm:$0xff] }
   0x4   :  { %v3044_v13 = vpack.c.bf16 %v550_v3, %v547_v2  ;;  %v505_v15 = vand.u32 4294901760, %v82_v11  ;;  %v508_v16 = vand.u32 4294901760, %v83_v12  ;;  %v101_v18 = vld [vmem:[%s4209_s1 + $0xa8] sm:$0xff]  ;;  %v3058_v22 = vsub.f32 %v98_v6, %v553_v10  ;;  %v84_v23 = vld [vmem:[%s4209_s1 + $0x20] sm:$0xff]  ;;  %v102_v37 = vld [vmem:[%s4209_s1 + $0xb0] sm:$0xff] }
   0x5   :  { %v3052_v19 = vpack.c.bf16 %v502_v8, %v499_v7  ;;  %v3054_v20 = vsub.f32 %v80_v4, %v499_v7  ;;  %v3056_v21 = vsub.f32 %v81_v5, %v502_v8  ;;  %v85_v24 = vld [vmem:[%s4209_s1 + $0x28] sm:$0xff]  ;;  %v3067_v25 = vpack.c.bf16 %v556_v14, %v553_v10  ;;  %v103_v42 = vld [vmem:[%s4209_s1 + $0xb8] sm:$0xff]  ;;  %v86_v51 = vld [vmem:[%s4209_s1 + $0x30] sm:$0xff] }
   0x6   :  { %2714 = vmatprep.subr.bf16.mxu0 %v3044_v13  ;;  %v3069_v26 = vsub.f32 %v99_v9, %v556_v14  ;;  %v3071_v27 = vpack.c.bf16 %v508_v16, %v505_v15  ;;  %v3073_v28 = vsub.f32 %v82_v11, %v505_v15  ;;  %v3076_v29 = vsub.f32 %v83_v12, %v508_v16  ;;  %v87_v56 = vld [vmem:[%s4209_s1 + $0x38] sm:$0xff]  ;;  %v104_v5 = vld [vmem:[%s4209_s1 + $0xc0] sm:$0xff]  ;;  %v105_v10 = vld [vmem:[%s4209_s1 + $0xc8] sm:$0xff] }
   0x7   :  { %4389 = vst [vmem:[#allocation6_spill] sm:$0xff] %v3054_v20  ;;  %4390 = vst [vmem:[#allocation7_spill] sm:$0xff] %v3056_v21  ;;  %2716 = vmatpush3.bf16.msra.mxu0 %v3052_v19  ;;  %v559_v30 = vand.u32 4294901760, %v100_v17  ;;  %v562_v31 = vand.u32 4294901760, %v101_v18  ;;  %v3078_v32 = vsub.f32 %v96_v0, %v547_v2  ;;  %v3081_v33 = vsub.f32 %v97_v1, %v550_v3  ;;  %v88_v16 = vld [vmem:[%s4209_s1 + $0x40] sm:$0xff] }
   0x8   :  { %4391 = vst [vmem:[#allocation8_spill] sm:$0xff] %v3067_v25  ;;  %2718 = vmatprep.subr.bf16.mxu0 %v3067_v25  ;;  %v511_v34 = vand.u32 4294901760, %v84_v23  ;;  %v514_v35 = vand.u32 4294901760, %v85_v24  ;;  %v4230_v36 = vand.u32 4294901760, %v3054_v20  ;;  %v4227_v49 = vand.u32 4294901760, %v3056_v21 }
   0x9   :  { %4392 = vst [vmem:[#allocation9_spill] sm:$0xff] %v3078_v32  ;;  %4393 = vst [vmem:[#allocation10_spill] sm:$0xff] %v3081_v33  ;;  %v3087_v38 = vpack.c.bf16 %v562_v31, %v559_v30  ;;  %v3089_v39 = vsub.f32 %v100_v17, %v559_v30  ;;  %v3091_v40 = vsub.f32 %v101_v18, %v562_v31  ;;  %v4234_v41 = vand.u32 4294901760, %v3078_v32  ;;  %v89_v30 = vld [vmem:[%s4209_s1 + $0x48] sm:$0xff] }
   0xa   :  { %v4231_v43 = vand.u32 4294901760, %v3081_v33  ;;  %v3098_v44 = vpack.c.bf16 %v514_v35, %v511_v34  ;;  %v3100_v45 = vsub.f32 %v84_v23, %v511_v34  ;;  %v3102_v46 = vsub.f32 %v85_v24, %v514_v35 }
   0xb   :  { %4394 = vst [vmem:[#allocation11_spill] sm:$0xff] %v3087_v38  ;;  %2720 = vmatpush3.bf16.msra.mxu0 %v3071_v27  ;;  %v951_v47 = vsub.f32 %v3078_v32, %v4234_v41  ;;  %v839_v48 = vsub.f32 %v3054_v20, %v4230_v36  ;;  %v565_v50 = vand.u32 4294901760, %v102_v37  ;;  %v568_v53 = vand.u32 4294901760, %v103_v42  ;;  %v2942_v36 = vld.sshfl [vmem:[%s4208_s0 + $0x8] sm:$0xff pattern:$0x76325410] }
   0xc   :  { %2722 = vmatprep.subr.bf16.mxu0 %v3087_v38  ;;  %v958_v52 = vsub.f32 %v3081_v33, %v4231_v43  ;;  %v4225_v54 = vand.u32 4294901760, %v3058_v22  ;;  %v4223_v55 = vand.u32 4294901760, %v3069_v26  ;;  %v846_v59 = vsub.f32 %v3056_v21, %v4227_v49 }
   0xd   :  { %v952_v57 = vand.u32 4294901760, %v951_v47  ;;  %v840_v58 = vand.u32 4294901760, %v839_v48  ;;  %v3127_v60 = vsub.f32 %v102_v37, %v565_v50  ;;  %v3129_v62 = vpack.c.bf16 %v568_v53, %v565_v50 }
   0xe   :  { %v959_v61 = vand.u32 4294901760, %v958_v52  ;;  %v3131_v63 = vsub.f32 %v103_v42, %v568_v53  ;;  %v965_v0 = vsub.f32 %v3058_v22, %v4225_v54  ;;  %v847_v1 = vand.u32 4294901760, %v846_v59  ;;  %v106_v42 = vld [vmem:[%s4209_s1 + $0xd0] sm:$0xff]  ;;  %v107_v52 = vld [vmem:[%s4209_s1 + $0xd8] sm:$0xff] }
   0xf   :  { %2724 = vmatpush3.bf16.msra.mxu0 %v3098_v44  ;;  %v972_v2 = vsub.f32 %v3069_v26, %v4223_v55  ;;  %v517_v3 = vand.u32 4294901760, %v86_v51  ;;  %v520_v4 = vand.u32 4294901760, %v87_v56  ;;  %v4221_v8 = vand.u32 4294901760, %v3073_v28 }
  0x10   :  { %v2745_v6 = vpack.c.bf16 %v959_v61, %v952_v57  ;;  %2726 = vmatprep.subr.bf16.mxu0 %v3129_v62  ;;  %v966_v7 = vand.u32 4294901760, %v965_v0  ;;  %v4220_v9 = vand.u32 4294901760, %v3076_v29  ;;  %v2747_v11 = vpack.c.bf16 %v847_v1, %v840_v58 }
  0x11   :  { %v973_v12 = vand.u32 4294901760, %v972_v2  ;;  %v3149_v14 = vpack.c.bf16 %v520_v4, %v517_v3  ;;  %v3151_v15 = vsub.f32 %v86_v51, %v517_v3  ;;  %v3156_v17 = vsub.f32 %v87_v56, %v520_v4 }
  0x12   :  { %2746 = vmatprep.subr.bf16.mxu1 %v2745_v6  ;;  %v853_v18 = vsub.f32 %v3073_v28, %v4221_v8  ;;  %v860_v23 = vsub.f32 %v3076_v29, %v4220_v9  ;;  %v571_v24 = vand.u32 4294901760, %v104_v5  ;;  %v574_v34 = vand.u32 4294901760, %v105_v10 }
  0x13   :  { %2748 = vmatpush3.bf16.msra.mxu1 %v2747_v11  ;;  %v2749_v31 = vpack.c.bf16 %v973_v12, %v966_v7  ;;  %2728 = vmatpush3.bf16.msra.mxu0 %v3149_v14  ;;  %v4219_v35 = vand.u32 4294901760, %v3089_v39  ;;  %v4218_v37 = vand.u32 4294901760, %v3091_v40  ;;  %v523_v51 = vand.u32 4294901760, %v88_v16  ;;  %v90_v12 = vld [vmem:[%s4209_s1 + $0x50] sm:$0xff] }
  0x14   :  { %v854_v47 = vand.u32 4294901760, %v853_v18  ;;  %v861_v48 = vand.u32 4294901760, %v860_v23  ;;  %v3173_v50 = vsub.f32 %v104_v5, %v571_v24  ;;  %v3178_v53 = vpack.c.bf16 %v574_v34, %v571_v24 }
  0x15   :  { %2750 = vmatprep.subr.bf16.mxu1 %v2749_v31  ;;  %v3180_v56 = vsub.f32 %v105_v10, %v574_v34  ;;  %v979_v57 = vsub.f32 %v3089_v39, %v4219_v35  ;;  %v986_v58 = vsub.f32 %v3091_v40, %v4218_v37  ;;  %v526_v61 = vand.u32 4294901760, %v89_v30  ;;  %v108_v31 = vld [vmem:[%s4209_s1 + $0xe0] sm:$0xff] }
  0x16   :  { %v2751_v59 = vpack.c.bf16 %v861_v48, %v854_v47  ;;  %v3188_v0 = vsub.f32 %v88_v16, %v523_v51  ;;  %v4215_v1 = vand.u32 4294901760, %v3100_v45  ;;  %2730 = vmatprep.subr.bf16.mxu0 %v3178_v53  ;;  %v4214_v4 = vand.u32 4294901760, %v3102_v46  ;;  %v91_v16 = vld [vmem:[%s4209_s1 + $0x58] sm:$0xff] }
  0x17   :  { %v980_v2 = vand.u32 4294901760, %v979_v57  ;;  %v987_v3 = vand.u32 4294901760, %v986_v58  ;;  %v577_v5 = vand.u32 4294901760, %v106_v42  ;;  %v3193_v6 = vpack.c.bf16 %v526_v61, %v523_v51 }
  0x18   :  { %2752 = vmatpush3.bf16.msra.mxu1 %v2751_v59  ;;  %v3195_v7 = vsub.f32 %v89_v30, %v526_v61  ;;  %v867_v10 = vsub.f32 %v3100_v45, %v4215_v1  ;;  %v580_v11 = vand.u32 4294901760, %v107_v52  ;;  %v874_v23 = vsub.f32 %v3102_v46, %v4214_v4 }
  0x19   :  { %v2753_v18 = vpack.c.bf16 %v987_v3, %v980_v2  ;;  %v3209_v24 = vsub.f32 %v106_v42, %v577_v5  ;;  %v4212_v30 = vand.u32 4294901760, %v3127_v60  ;;  %2732 = vmatpush3.bf16.msra.mxu0 %v3193_v6  ;;  %v4213_v51 = vand.u32 4294901760, %v3131_v63  ;;  %v109_v3 = vld [vmem:[%s4209_s1 + $0xe8] sm:$0xff] }
  0x1a   :  { %v868_v34 = vand.u32 4294901760, %v867_v10  ;;  %v3216_v47 = vpack.c.bf16 %v580_v11, %v577_v5  ;;  %v3218_v48 = vsub.f32 %v107_v52, %v580_v11  ;;  %v875_v57 = vand.u32 4294901760, %v874_v23 }
  0x1b   :  { %2754 = vmatprep.subr.bf16.mxu1 %v2753_v18  ;;  %v993_v42 = vsub.f32 %v3127_v60, %v4212_v30  ;;  %v529_v58 = vand.u32 4294901760, %v90_v12  ;;  %v532_v59 = vand.u32 4294901760, %v91_v16  ;;  %v1000_v61 = vsub.f32 %v3131_v63, %v4213_v51  ;;  %v92_v30 = vld [vmem:[%s4209_s1 + $0x60] sm:$0xff] }
  0x1c   :  { %4395 = vst [vmem:[#allocation12_spill] sm:$0xff] %v3216_v47  ;;  %2734 = vmatprep.subr.bf16.mxu0 %v3216_v47  ;;  %v4217_v2 = vand.u32 4294901760, %v3151_v15  ;;  %v4216_v52 = vand.u32 4294901760, %v3156_v17  ;;  %v583_v5 = vand.u32 4294901760, %v108_v31  ;;  %v2755_v10 = vpack.c.bf16 %v875_v57, %v868_v34 }
  0x1d   :  { %v994_v11 = vand.u32 4294901760, %v993_v42  ;;  %v3233_v18 = vpack.c.bf16 %v532_v59, %v529_v58  ;;  %v3235_v23 = vsub.f32 %v90_v12, %v529_v58  ;;  %v1001_v51 = vand.u32 4294901760, %v1000_v61  ;;  %v93_v12 = vld [vmem:[%s4209_s1 + $0x68] sm:$0xff] }
  0x1e   :  { %v3240_v4 = vsub.f32 %v91_v16, %v532_v59  ;;  %v881_v1 = vsub.f32 %v3151_v15, %v4217_v2  ;;  %v888_v34 = vsub.f32 %v3156_v17, %v4216_v52  ;;  %2756 = vmatpush3.bf16.msra.mxu1 %v2755_v10  ;;  %v586_v57 = vand.u32 4294901760, %v109_v3  ;;  %v110_v59 = vld [vmem:[%s4209_s1 + $0xf0] sm:$0xff]  ;;  %v111_v10 = vld [vmem:[%s4209_s1 + $0xf8] sm:$0xff] }
  0x1f   :  { %4396 = vst [vmem:[#allocation13_spill] sm:$0xff] %v3233_v18  ;;  %4397 = vst [vmem:[#allocation14_spill] sm:$0xff] %v3235_v23  ;;  %2736 = vmatpush3.bf16.msra.mxu0 %v3233_v18  ;;  %v3252_v42 = vsub.f32 %v108_v31, %v583_v5  ;;  %v4222_v16 = vand.u32 4294901760, %v3173_v50  ;;  %v4224_v58 = vand.u32 4294901760, %v3180_v56  ;;  %v2757_v61 = vpack.c.bf16 %v1001_v51, %v994_v11 }
  0x20   :  { %4398 = vst [vmem:[#allocation15_spill] sm:$0xff] %v3240_v4  ;;  %v882_v52 = vand.u32 4294901760, %v881_v1  ;;  %v889_v2 = vand.u32 4294901760, %v888_v34  ;;  %v535_v37 = vand.u32 4294901760, %v92_v30  ;;  %v3262_v35 = vpack.c.bf16 %v586_v57, %v583_v5 }
  0x21   :  { %4399 = vst [vmem:[#allocation16_spill] sm:$0xff] %v3252_v42  ;;  %v3264_v31 = vsub.f32 %v109_v3, %v586_v57  ;;  %v1007_v9 = vsub.f32 %v3173_v50, %v4222_v16  ;;  %v1014_v8 = vsub.f32 %v3180_v56, %v4224_v58  ;;  %2758 = vmatprep.subr.bf16.mxu1 %v2757_v61  ;;  %v538_v51 = vand.u32 4294901760, %v93_v12  ;;  %v94_v3 = vld [vmem:[%s4209_s1 + $0x70] sm:$0xff]  ;;  %v95_v61 = vld [vmem:[%s4209_s1 + $0x78] sm:$0xff] }
  0x22   :  { %4400 = vst [vmem:[#allocation17_spill] sm:$0xff] %v3262_v35  ;;  %v2759_v1 = vpack.c.bf16 %v889_v2, %v882_v52  ;;  %v3272_v11 = vsub.f32 %v92_v30, %v535_v37  ;;  %v4226_v34 = vand.u32 4294901760, %v3188_v0  ;;  %2738 = vmatprep.subr.bf16.mxu0 %v3262_v35  ;;  %v4228_v16 = vand.u32 4294901760, %v3195_v7 }
  0x23   :  { %4401 = vst [vmem:[#allocation18_spill] sm:$0xff] %v3264_v31  ;;  %v1008_v5 = vand.u32 4294901760, %v1007_v9  ;;  %v1015_v57 = vand.u32 4294901760, %v1014_v8  ;;  %v589_v55 = vand.u32 4294901760, %v110_v59  ;;  %v3280_v58 = vpack.c.bf16 %v538_v51, %v535_v37 }
  0x24   :  { %2760 = vmatpush3.bf16.msra.mxu1 %v2759_v1  ;;  %v3282_v2 = vsub.f32 %v93_v12, %v538_v51  ;;  %v895_v30 = vsub.f32 %v3188_v0, %v4226_v34  ;;  %v592_v52 = vand.u32 4294901760, %v111_v10  ;;  %v902_v8 = vsub.f32 %v3195_v7, %v4228_v16 }
  0x25   :  { %4402 = vst [vmem:[#allocation19_spill] sm:$0xff] %v3280_v58  ;;  %v2761_v54 = vpack.c.bf16 %v1015_v57, %v1008_v5  ;;  %v3293_v9 = vsub.f32 %v110_v59, %v589_v55  ;;  %v4229_v37 = vand.u32 4294901760, %v3209_v24  ;;  %2740 = vmatpush3.bf16.msra.mxu0 %v3280_v58  ;;  %v4232_v34 = vand.u32 4294901760, %v3218_v48 }
  0x26   :  { %v896_v12 = vand.u32 4294901760, %v895_v30  ;;  %v3297_v1 = vpack.c.bf16 %v592_v52, %v589_v55  ;;  %v3299_v51 = vsub.f32 %v111_v10, %v592_v52  ;;  %v903_v49 = vand.u32 4294901760, %v902_v8 }
  0x27   :  { %2762 = vmatprep.subr.bf16.mxu1 %v2761_v54  ;;  %v1021_v5 = vsub.f32 %v3209_v24, %v4229_v37  ;;  %v541_v57 = vand.u32 4294901760, %v94_v3  ;;  %v544_v59 = vand.u32 4294901760, %v95_v61  ;;  %v1028_v30 = vsub.f32 %v3218_v48, %v4232_v34  ;;  %v2941_v37 = vld.sshfl [vmem:[%s4208_s0] sm:$0xff pattern:$0x76325410] }
  0x28   :  { %4403 = vst [vmem:[#allocation20_spill] sm:$0xff] %v3297_v1  ;;  %4404 = vst [vmem:[#allocation21_spill] sm:$0xff] %v3299_v51  ;;  %2742 = vmatprep.subr.bf16.mxu0 %v3297_v1  ;;  %v4233_v55 = vand.u32 4294901760, %v3235_v23  ;;  %v4235_v10 = vand.u32 4294901760, %v3240_v4  ;;  %v2763_v52 = vpack.c.bf16 %v903_v49, %v896_v12  ;;  %v4252_v41 = vand.u32 4294901760, %v3282_v2 }
  0x29   :  { %v1022_v16 = vand.u32 4294901760, %v1021_v5  ;;  %v3311_v54 = vpack.c.bf16 %v544_v59, %v541_v57  ;;  %v3313_v8 = vsub.f32 %v94_v3, %v541_v57  ;;  %v1029_v43 = vand.u32 4294901760, %v1028_v30  ;;  %v2943_v12 = vld.sshfl [vmem:[%s4208_s0 + $0x10] sm:$0xff pattern:$0x76325410] }
  0x2a   :  { %v3321_v34 = vsub.f32 %v95_v61, %v544_v59  ;;  %v909_v49 = vsub.f32 %v3235_v23, %v4233_v55  ;;  %v916_v3 = vsub.f32 %v3240_v4, %v4235_v10  ;;  %2764 = vmatpush3.bf16.msra.mxu1 %v2763_v52  ;;  %v4242_v5 = vand.u32 4294901760, %v3252_v42  ;;  %v2944_v10 = vld.sshfl [vmem:[%s4208_s0 + $0x18] sm:$0xff pattern:$0x76325410] }
  0x2b   :  { %4405 = vst [vmem:[#allocation22_spill] sm:$0xff] %v3311_v54  ;;  %2744 = vmatpush3.bf16.msra.mxu0 %v3311_v54  ;;  %v4247_v61 = vand.u32 4294901760, %v3264_v31  ;;  %v4253_v57 = vand.u32 4294901760, %v3272_v11  ;;  %v2765_v59 = vpack.c.bf16 %v1029_v43, %v1022_v16  ;;  %v4254_v1 = vand.u32 4294901760, %v3299_v51 }
  0x2c   :  { %v910_v30 = vand.u32 4294901760, %v909_v49  ;;  %v917_v55 = vand.u32 4294901760, %v916_v3  ;;  %v1035_v52 = vsub.f32 %v3252_v42, %v4242_v5  ;;  %v930_v49 = vsub.f32 %v3282_v2, %v4252_v41 }
  0x2d   :  { %v1042_v54 = vsub.f32 %v3264_v31, %v4247_v61  ;;  %v923_v43 = vsub.f32 %v3272_v11, %v4253_v57  ;;  %2766 = vmatprep.subr.bf16.mxu1 %v2765_v59  ;;  %v4255_v3 = vand.u32 4294901760, %v3293_v9  ;;  %v195_v61 = vcombine.high %v2941_v37, %v2942_v36  ;;  %v2945_v59 = vld.sshfl [vmem:[%s4208_s0 + $0x20] sm:$0xff pattern:$0x76325410] }
  0x2e   :  { %v2767_v16 = vpack.c.bf16 %v917_v55, %v910_v30  ;;  %v1036_v58 = vand.u32 4294901760, %v1035_v52  ;;  %v931_v4 = vand.u32 4294901760, %v930_v49  ;;  %v194_v31 = vcombine.low %v2941_v37, %v2942_v36 }
  0x2f   :  { %v1043_v5 = vand.u32 4294901760, %v1042_v54  ;;  %v924_v42 = vand.u32 4294901760, %v923_v43  ;;  %v1049_v55 = vsub.f32 %v3293_v9, %v4255_v3  ;;  %v213_v41 = vcombine.high %v2943_v12, %v2944_v10 }
  0x30   :  { %2768 = vmatpush3.bf16.msra.mxu1 %v2767_v16  ;;  %v212_v57 = vcombine.low %v2943_v12, %v2944_v10  ;;  %v1056_v54 = vsub.f32 %v3299_v51, %v4254_v1  ;;  %v3363_v52 = vand.u32 4294901760, %v195_v61  ;;  %v3365_v43 = vand.u32 4294901760, %v194_v31  ;;  %v2946_v10 = vld.sshfl [vmem:[%s4208_s0 + $0x28] sm:$0xff pattern:$0x76325410] }
  0x31   :  { %v2769_v23 = vpack.c.bf16 %v1043_v5, %v1036_v58  ;;  %v2771_v30 = vpack.c.bf16 %v931_v4, %v924_v42  ;;  %v1050_v36 = vand.u32 4294901760, %v1049_v55  ;;  %v4256_v58 = vand.u32 4294901760, %v3313_v8  ;;  %v2947_v55 = vld.sshfl [vmem:[%s4208_s0 + $0x30] sm:$0xff pattern:$0x76325410] }
  0x32   :  { %4406 = vst [vmem:[#allocation23_spill] sm:$0xff] %v3363_v52  ;;  %4407 = vst [vmem:[#allocation24_spill] sm:$0xff] %v3365_v43  ;;  %v3368_v37 = vand.u32 4294901760, %v213_v41  ;;  %v3370_v5 = vand.u32 4294901760, %v212_v57  ;;  %v1057_v4 = vand.u32 4294901760, %v1056_v54  ;;  %v4259_v42 = vand.u32 4294901760, %v3321_v34  ;;  %1060 = vmatprep.mubr.f32.mxu1 %v3363_v52 }
  0x33   :  { %2770 = vmatprep.subr.bf16.mxu1 %v2769_v23  ;;  %v3377_v12 = vsub.f32 %v195_v61, %v3363_v52  ;;  %v3380_v23 = vsub.f32 %v194_v31, %v3365_v43  ;;  %v937_v16 = vsub.f32 %v3313_v8, %v4256_v58  ;;  %v2777_v49 = vpack.c.bf16 %v3081_v33, %v3078_v32  ;;  %v2948_v52 = vld.sshfl [vmem:[%s4208_s0 + $0x38] sm:$0xff pattern:$0x76325410] }
  0x34   :  { %2772 = vmatpush3.bf16.msra.mxu1 %v2771_v30  ;;  %4408 = vst [vmem:[#allocation25_spill] sm:$0xff] %v3368_v37  ;;  %4409 = vst [vmem:[#allocation26_spill] sm:$0xff] %v3370_v5  ;;  %v3392_v30 = vsub.f32 %v213_v41, %v3368_v37  ;;  %v3395_v61 = vsub.f32 %v212_v57, %v3370_v5  ;;  %v2773_v31 = vpack.c.bf16 %v1057_v4, %v1050_v36 }
  0x35   :  { %4410 = vst [vmem:[#allocation27_spill] sm:$0xff] %v3377_v12  ;;  %4411 = vst [vmem:[#allocation28_spill] sm:$0xff] %v3380_v23  ;;  %v944_v54 = vsub.f32 %v3321_v34, %v4259_v42  ;;  %v4260_v1 = vand.u32 4294901760, %v3377_v12  ;;  %v4263_v3 = vand.u32 4294901760, %v3380_v23  ;;  %v938_v58 = vand.u32 4294901760, %v937_v16  ;;  %2778 = vmatprep.subr.bf16.mxu0 %v2777_v49 }
  0x36   :  { %4412 = vst [vmem:[#allocation29_spill] sm:$0xff] %v3392_v30  ;;  %v4269_v41 = vand.u32 4294901760, %v3392_v30  ;;  %v4273_v57 = vand.u32 4294901760, %v3395_v61  ;;  %2774 = vmatprep.subr.bf16.mxu1 %v2773_v31  ;;  %v2779_v16 = vpack.c.bf16 %v3056_v21, %v3054_v20  ;;  %v2949_v49 = vld.sshfl [vmem:[%s4208_s0 + $0x40] sm:$0xff pattern:$0x76325410]  ;;  %v230_v33 = vcombine.low %v2945_v59, %v2946_v10 }
  0x37   :  { %v945_v36 = vand.u32 4294901760, %v944_v54  ;;  %v597_v4 = vsub.f32 %v3377_v12, %v4260_v1  ;;  %v603_v42 = vsub.f32 %v3380_v23, %v4263_v3  ;;  %v231_v12 = vcombine.high %v2945_v59, %v2946_v10  ;;  %v2950_v3 = vld.sshfl [vmem:[%s4208_s0 + $0x48] sm:$0xff pattern:$0x76325410] }
  0x38   :  { %v612_v31 = vsub.f32 %v3392_v30, %v4269_v41  ;;  %v618_v54 = vsub.f32 %v3395_v61, %v4273_v57  ;;  %v2951_v23 = vld.sshfl [vmem:[%s4208_s0 + $0x50] sm:$0xff pattern:$0x76325410]  ;;  %v2952_v41 = vld.sshfl [vmem:[%s4208_s0 + $0x58] sm:$0xff pattern:$0x76325410]  ;;  %v2783_v10 = vpack.c.bf16 %v3076_v29, %v3073_v28 }
  0x39   :  { %v2775_v1 = vpack.c.bf16 %v945_v36, %v938_v58  ;;  %v598_v21 = vand.u32 4294901760, %v597_v4  ;;  %v604_v20 = vand.u32 4294901760, %v603_v42  ;;  %v3433_v58 = vand.u32 4294901760, %v231_v12 }
  0x3a   :  { %v613_v30 = vand.u32 4294901760, %v612_v31  ;;  %v619_v32 = vand.u32 4294901760, %v618_v54  ;;  %v2781_v36 = vpack.c.bf16 %v3069_v26, %v3058_v22  ;;  %v3437_v57 = vand.u32 4294901760, %v230_v33 }
  0x3b   :  { %2776 = vmatpush3.bf16.msra.mxu1 %v2775_v1  ;;  %4413 = vst [vmem:[#allocation30_spill] sm:$0xff] %v3433_v58  ;;  %599 = vmatprep.mubr.f32.mxu0 %v598_v21  ;;  %v249_v4 = vcombine.high %v2947_v55, %v2948_v52  ;;  %v248_v42 = vcombine.low %v2947_v55, %v2948_v52 }
  0x3c   :  { %4414 = vst [vmem:[#allocation31_spill] sm:$0xff] %v3437_v57  ;;  %2810 = vmatprep.subr.bf16.mxu1 %v3044_v13  ;;  %605 = vmatmul.mubr.f32.vlgmr.msra.gmra.mrb[0].mxu0 %v604_v20  ;;  %v3441_v59 = vsub.f32 %v231_v12, %v3433_v58  ;;  %v3446_v1 = vsub.f32 %v230_v33, %v3437_v57 }
  0x3d   :  { %614 = vmatprep.mubr.f32.mxu0 %v613_v30  ;;  %2780 = vmatpush3.bf16.msra.mxu0 %v2779_v16  ;;  %v3448_v31 = vand.u32 4294901760, %v249_v4  ;;  %v3450_v21 = vand.u32 4294901760, %v248_v42  ;;  %v267_v20 = vcombine.high %v2949_v49, %v2950_v3  ;;  %v266_v52 = vcombine.low %v2949_v49, %v2950_v3 }
  0x3e   :  { %4415 = vst [vmem:[#allocation32_spill] sm:$0xff] %v3441_v59  ;;  %4416 = vst [vmem:[#allocation33_spill] sm:$0xff] %v3446_v1  ;;  %v4278_v54 = vand.u32 4294901760, %v3441_v59  ;;  %1062 = vmatmul.mubr.f32.vlgmr.msra.gmra.mrb[0].mxu1 %v3365_v43  ;;  %2782 = vmatprep.subr.bf16.mxu0 %v2781_v36  ;;  %v2785_v12 = vpack.c.bf16 %v3091_v40, %v3089_v39  ;;  %v285_v16 = vcombine.high %v2951_v23, %v2952_v41 }
  0x3f   :  { %4417 = vst [vmem:[#allocation34_spill] sm:$0xff] %v3448_v31  ;;  %4418 = vst [vmem:[#allocation35_spill] sm:$0xff] %v3450_v21  ;;  %2812 = vmatpush3.bf16.msra.mxu1 %v3052_v19  ;;  %v3459_v33 = vsub.f32 %v249_v4, %v3448_v31  ;;  %1067 = vmatprep.mubr.f32.mxu1 %v3368_v37  ;;  %v3463_v30 = vsub.f32 %v248_v42, %v3450_v21  ;;  %v3468_v49 = vand.u32 4294901760, %v267_v20  ;;  %v2953_v4 = vld.sshfl [vmem:[%s4208_s0 + $0x60] sm:$0xff pattern:$0x76325410] }
  0x40   :  { %620 = vmatmul.mubr.f32.gmra.mrb[2].mxu0 %v619_v32  ;;  %v627_v3 = vsub.f32 %v3441_v59, %v4278_v54  ;;  %v3470_v36 = vand.u32 4294901760, %v266_v52  ;;  %2814 = vmatprep.subr.bf16.mxu1 %v3067_v25  ;;  %v284_v55 = vcombine.low %v2951_v23, %v2952_v41  ;;  %v4423_v42 = vand.u32 4294901760, %v3446_v1  ;;  %v2954_v59 = vld.sshfl [vmem:[%s4208_s0 + $0x68] sm:$0xff pattern:$0x76325410] }
  0x41   :  { %4419 = vst [vmem:[#allocation36_spill] sm:$0xff] %v3459_v33  ;;  %4420 = vst [vmem:[#allocation37_spill] sm:$0xff] %v3463_v30  ;;  %v4284_v32 = vand.u32 4294901760, %v3459_v33  ;;  %2784 = vmatpush3.bf16.msra.mxu0 %v2783_v10  ;;  %v3481_v54 = vand.u32 4294901760, %v285_v16  ;;  %v3488_v41 = vsub.f32 %v267_v20, %v3468_v49 }
  0x42   :  { %4421 = vst [vmem:[#allocation38_spill] sm:$0xff] %v3468_v49  ;;  %4422 = vst [vmem:[#allocation39_spill] sm:$0xff] %v3470_v36  ;;  %v633_v37 = vsub.f32 %v3446_v1, %v4423_v42  ;;  %v628_v23 = vand.u32 4294901760, %v627_v3  ;;  %1069 = vmatmul.mubr.f32.gmra.mrb[2].mxu1 %v3370_v5  ;;  %v3491_v25 = vsub.f32 %v266_v52, %v3470_v36  ;;  %v3493_v42 = vand.u32 4294901760, %v284_v55 }
  0x43   :  { %4424 = vst [vmem:[#allocation40_spill] sm:$0xff] %v3481_v54  ;;  %4425 = vst [vmem:[#allocation41_spill] sm:$0xff] %v3488_v41  ;;  %2786 = vmatprep.subr.bf16.mxu0 %v2785_v12  ;;  %v642_v10 = vsub.f32 %v3459_v33, %v4284_v32  ;;  %v4428_v1 = vand.u32 4294901760, %v3463_v30  ;;  %1074 = vmatprep.mubr.f32.mxu1 %v3433_v58  ;;  %v3504_v20 = vsub.f32 %v285_v16, %v3481_v54  ;;  %v2958_v16 = vld.sshfl [vmem:[%s4208_s0 + $0x88] sm:$0xff pattern:$0x76325410] }
  0x44   :  { %4426 = vst [vmem:[#allocation42_spill] sm:$0xff] %v3491_v25  ;;  %4427 = vst [vmem:[#allocation43_spill] sm:$0xff] %v3493_v42  ;;  %v634_v43 = vand.u32 4294901760, %v633_v37  ;;  %2816 = vmatpush3.bf16.msra.mxu1 %v3071_v27  ;;  %629 = vmatprep.mubr.f32.mxu0 %v628_v23  ;;  %v4289_v52 = vand.u32 4294901760, %v3488_v41  ;;  %v4290_v37 = vand.u32 4294901760, %v3491_v25  ;;  %v3509_v12 = vsub.f32 %v284_v55, %v3493_v42 }
  0x45   :  { %v648_v3 = vsub.f32 %v3463_v30, %v4428_v1  ;;  %2818 = vmatprep.subr.bf16.mxu1 %v3087_v38  ;;  %v2955_v1 = vld.sshfl [vmem:[%s4208_s0 + $0x70] sm:$0xff pattern:$0x76325410]  ;;  %v643_v32 = vand.u32 4294901760, %v642_v10  ;;  %v2787_v10 = vpack.c.bf16 %v3102_v46, %v3100_v45 }
  0x46   :  { %4429 = vst [vmem:[#allocation44_spill] sm:$0xff] %v3509_v12  ;;  %635 = vmatmul.mubr.f32.gmra.mrb[4].mxu0 %v634_v43  ;;  %v2956_v23 = vld.sshfl [vmem:[%s4208_s0 + $0x78] sm:$0xff pattern:$0x76325410]  ;;  %v657_v55 = vsub.f32 %v3488_v41, %v4289_v52  ;;  %v663_v5 = vsub.f32 %v3491_v25, %v4290_v37  ;;  %1076 = vmatmul.mubr.f32.gmra.mrb[4].mxu1 %v3437_v57  ;;  %v4430_v52 = vand.u32 4294901760, %v3504_v20  ;;  %v4431_v41 = vand.u32 4294901760, %v3509_v12 }
  0x47   :  { %v649_v58 = vand.u32 4294901760, %v648_v3  ;;  %v2957_v3 = vld.sshfl [vmem:[%s4208_s0 + $0x80] sm:$0xff pattern:$0x76325410]  ;;  %644 = vmatprep.mubr.f32.mxu0 %v643_v32  ;;  %1081 = vmatprep.mubr.f32.mxu1 %v3448_v31  ;;  %v303_v57 = vcombine.high %v2953_v4, %v2954_v59  ;;  %v302_v43 = vcombine.low %v2953_v4, %v2954_v59  ;;  %v2789_v59 = vpack.c.bf16 %v3131_v63, %v3127_v60 }
  0x48   :  { %v672_v37 = vsub.f32 %v3504_v20, %v4430_v52  ;;  %v658_v25 = vand.u32 4294901760, %v657_v55  ;;  %v678_v30 = vsub.f32 %v3509_v12, %v4431_v41  ;;  %2788 = vmatpush3.bf16.msra.mxu0 %v2787_v10  ;;  %2820 = vmatpush3.bf16.msra.mxu1 %v3098_v44  ;;  %v664_v33 = vand.u32 4294901760, %v663_v5  ;;  %v2959_v4 = vld.sshfl [vmem:[%s4208_s0 + $0x90] sm:$0xff pattern:$0x76325410] }
  0x49   :  { %v3543_v38 = vand.u32 4294901760, %v303_v57  ;;  %v3545_v32 = vand.u32 4294901760, %v302_v43  ;;  %2822 = vmatprep.subr.bf16.mxu1 %v3129_v62  ;;  %v2960_v5 = vld.sshfl [vmem:[%s4208_s0 + $0x98] sm:$0xff pattern:$0x76325410]  ;;  %v321_v41 = vcombine.high %v2955_v1, %v2956_v23  ;;  %2790 = vmatprep.subr.bf16.mxu0 %v2789_v59  ;;  %v339_v10 = vcombine.high %v2957_v3, %v2958_v16 }
  0x4a   :  { %650 = vmatmul.mubr.f32.gmra.mrb[6].mxu0 %v649_v58  ;;  %v673_v52 = vand.u32 4294901760, %v672_v37  ;;  %1083 = vmatmul.mubr.f32.gmra.mrb[6].mxu1 %v3450_v21  ;;  %v320_v37 = vcombine.low %v2955_v1, %v2956_v23  ;;  %v679_v55 = vand.u32 4294901760, %v678_v30  ;;  %v2791_v21 = vpack.c.bf16 %v3156_v17, %v3151_v15 }
  0x4b   :  { %4432 = vst [vmem:[#allocation45_spill] sm:$0xff] %v3543_v38  ;;  %4433 = vst [vmem:[#allocation46_spill] sm:$0xff] %v3545_v32  ;;  %659 = vmatprep.mubr.f32.mxu0 %v658_v25  ;;  %v3558_v58 = vsub.f32 %v303_v57, %v3543_v38  ;;  %1088 = vmatprep.mubr.f32.mxu1 %v3468_v49  ;;  %v3562_v25 = vsub.f32 %v302_v43, %v3545_v32  ;;  %v3569_v49 = vand.u32 4294901760, %v321_v41 }
  0x4c   :  { %v338_v31 = vcombine.low %v2957_v3, %v2958_v16  ;;  %2824 = vmatpush3.bf16.msra.mxu1 %v3149_v14  ;;  %v3571_v43 = vand.u32 4294901760, %v320_v37  ;;  %v3575_v30 = vand.u32 4294901760, %v339_v10  ;;  %2792 = vmatpush3.bf16.msra.mxu0 %v2791_v21  ;;  %v2962_v21 = vld.sshfl [vmem:[%s4208_s0 + $0xa8] sm:$0xff pattern:$0x76325410] }
  0x4d   :  { %4434 = vst [vmem:[#allocation47_spill] sm:$0xff] %v3558_v58  ;;  %4435 = vst [vmem:[#allocation48_spill] sm:$0xff] %v3562_v25  ;;  %v4310_v57 = vand.u32 4294901760, %v3558_v58  ;;  %v4315_v12 = vand.u32 4294901760, %v3562_v25  ;;  %2826 = vmatprep.subr.bf16.mxu1 %v3178_v53  ;;  %v3586_v23 = vsub.f32 %v321_v41, %v3569_v49 }
  0x4e   :  { %665 = vmatmul.mubr.f32.gmra.mrb[8].mxu0 %v664_v33  ;;  %4436 = vst [vmem:[#allocation49_spill] sm:$0xff] %v3569_v49  ;;  %4437 = vst [vmem:[#allocation50_spill] sm:$0xff] %v3571_v43  ;;  %1090 = vmatmul.mubr.f32.gmra.mrb[8].mxu1 %v3470_v36  ;;  %v3577_v1 = vand.u32 4294901760, %v338_v31  ;;  %v3590_v3 = vsub.f32 %v320_v37, %v3571_v43  ;;  %v356_v36 = vcombine.low %v2959_v4, %v2960_v5  ;;  %v2961_v37 = vld.sshfl [vmem:[%s4208_s0 + $0xa0] sm:$0xff pattern:$0x76325410] }
  0x4f   :  { %674 = vmatprep.mubr.f32.mxu0 %v673_v52  ;;  %4438 = vst [vmem:[#allocation51_spill] sm:$0xff] %v3575_v30  ;;  %v687_v33 = vsub.f32 %v3558_v58, %v4310_v57  ;;  %v693_v16 = vsub.f32 %v3562_v25, %v4315_v12  ;;  %4440 = vst [vmem:[#allocation53_spill] sm:$0xff] %v3586_v23  ;;  %1095 = vmatprep.mubr.f32.mxu1 %v3481_v54  ;;  %v4322_v41 = vand.u32 4294901760, %v3586_v23 }
  0x50   :  { %4439 = vst [vmem:[#allocation52_spill] sm:$0xff] %v3577_v1  ;;  %4441 = vst [vmem:[#allocation54_spill] sm:$0xff] %v3590_v3  ;;  %v3593_v52 = vsub.f32 %v339_v10, %v3575_v30  ;;  %v3596_v59 = vsub.f32 %v338_v31, %v3577_v1  ;;  %v357_v57 = vcombine.high %v2959_v4, %v2960_v5  ;;  %v4323_v25 = vand.u32 4294901760, %v3590_v3 }
  0x51   :  { %v688_v58 = vand.u32 4294901760, %v687_v33  ;;  %v694_v12 = vand.u32 4294901760, %v693_v16  ;;  %2828 = vmatpush3.bf16.msra.mxu1 %v3193_v6  ;;  %v702_v10 = vsub.f32 %v3586_v23, %v4322_v41  ;;  %v2793_v16 = vpack.c.bf16 %v3180_v56, %v3173_v50 }
  0x52   :  { %4442 = vst [vmem:[#allocation55_spill] sm:$0xff] %v3593_v52  ;;  %4443 = vst [vmem:[#allocation56_spill] sm:$0xff] %v3596_v59  ;;  %680 = vmatmul.mubr.f32.gmra.mrb[10].mxu0 %v679_v55  ;;  %1097 = vmatmul.mubr.f32.gmra.mrb[10].mxu1 %v3493_v42  ;;  %v4326_v31 = vand.u32 4294901760, %v3593_v52  ;;  %v3610_v5 = vand.u32 4294901760, %v357_v57  ;;  %v3612_v55 = vand.u32 4294901760, %v356_v36  ;;  %v708_v33 = vsub.f32 %v3590_v3, %v4323_v25 }
  0x53   :  { %2830 = vmatprep.subr.bf16.mxu1 %v3216_v47  ;;  %689 = vmatprep.mubr.f32.mxu0 %v688_v58  ;;  %v4446_v42 = vand.u32 4294901760, %v3596_v59  ;;  %v2963_v25 = vld.sshfl [vmem:[%s4208_s0 + $0xb0] sm:$0xff pattern:$0x76325410]  ;;  %v375_v23 = vcombine.high %v2961_v37, %v2962_v21 }
  0x54   :  { %4444 = vst [vmem:[#allocation57_spill] sm:$0xff] %v3610_v5  ;;  %4445 = vst [vmem:[#allocation58_spill] sm:$0xff] %v3612_v55  ;;  %1102 = vmatprep.mubr.f32.mxu1 %v3543_v38  ;;  %v717_v4 = vsub.f32 %v3593_v52, %v4326_v31  ;;  %v3631_v54 = vsub.f32 %v357_v57, %v3610_v5  ;;  %v3634_v41 = vsub.f32 %v356_v36, %v3612_v55  ;;  %v2964_v38 = vld.sshfl [vmem:[%s4208_s0 + $0xb8] sm:$0xff pattern:$0x76325410] }
  0x55   :  { %v723_v58 = vsub.f32 %v3596_v59, %v4446_v42  ;;  %v703_v31 = vand.u32 4294901760, %v702_v10  ;;  %v709_v52 = vand.u32 4294901760, %v708_v33  ;;  %2794 = vmatprep.subr.bf16.mxu0 %v2793_v16  ;;  %v2965_v42 = vld.sshfl [vmem:[%s4208_s0 + $0xc0] sm:$0xff pattern:$0x76325410]  ;;  %v374_v10 = vcombine.low %v2961_v37, %v2962_v21  ;;  %2832 = vmatpush3.bf16.msra.mxu1 %v3233_v18  ;;  %v4457_v18 = vld [vmem:[#allocation20_spill] sm:$0xff] }
  0x56   :  { %4447 = vst [vmem:[#allocation59_spill] sm:$0xff] %v3631_v54  ;;  %4448 = vst [vmem:[#allocation60_spill] sm:$0xff] %v3634_v41  ;;  %695 = vmatmul.mubr.f32.gmra.mrb[12].mxu0 %v694_v12  ;;  %v718_v57 = vand.u32 4294901760, %v717_v4  ;;  %1104 = vmatmul.mubr.f32.gmra.mrb[12].mxu1 %v3545_v32  ;;  %v4335_v36 = vand.u32 4294901760, %v3631_v54  ;;  %v4336_v59 = vand.u32 4294901760, %v3634_v41  ;;  %v2795_v12 = vpack.c.bf16 %v3195_v7, %v3188_v0 }
  0x57   :  { %704 = vmatprep.mubr.f32.mxu0 %v703_v31  ;;  %v724_v3 = vand.u32 4294901760, %v723_v58  ;;  %1109 = vmatprep.mubr.f32.mxu1 %v3569_v49  ;;  %v2966_v33 = vld.sshfl [vmem:[%s4208_s0 + $0xc8] sm:$0xff pattern:$0x76325410]  ;;  %v3664_v37 = vand.u32 4294901760, %v375_v23  ;;  %v3666_v21 = vand.u32 4294901760, %v374_v10  ;;  %v2797_v58 = vpack.c.bf16 %v3218_v48, %v3209_v24 }
  0x58   :  { %v732_v4 = vsub.f32 %v3631_v54, %v4335_v36  ;;  %v738_v31 = vsub.f32 %v3634_v41, %v4336_v59  ;;  %v2967_v16 = vld.sshfl [vmem:[%s4208_s0 + $0xd0] sm:$0xff pattern:$0x76325410]  ;;  %2834 = vmatprep.subr.bf16.mxu1 %v3262_v35  ;;  %v393_v59 = vcombine.high %v2963_v25, %v2964_v38  ;;  %v392_v49 = vcombine.low %v2963_v25, %v2964_v38  ;;  %v2968_v32 = vld.sshfl [vmem:[%s4208_s0 + $0xd8] sm:$0xff pattern:$0x76325410] }
  0x59   :  { %4449 = vst [vmem:[#allocation61_spill] sm:$0xff] %v3664_v37  ;;  %4450 = vst [vmem:[#allocation62_spill] sm:$0xff] %v3666_v21  ;;  %v3676_v41 = vsub.f32 %v375_v23, %v3664_v37  ;;  %2796 = vmatpush3.bf16.msra.mxu0 %v2795_v12  ;;  %v3680_v54 = vsub.f32 %v374_v10, %v3666_v21  ;;  %v4454_v38 = vld [vmem:[#allocation14_spill] sm:$0xff]  ;;  %v4455_v25 = vld [vmem:[#allocation15_spill] sm:$0xff]  ;;  %v410_v12 = vcombine.low %v2965_v42, %v2966_v33 }
  0x5a   :  { %710 = vmatmul.mubr.f32.gmra.mrb[14].mxu0 %v709_v52  ;;  %v733_v36 = vand.u32 4294901760, %v732_v4  ;;  %1111 = vmatmul.mubr.f32.gmra.mrb[14].mxu1 %v3571_v43  ;;  %v739_v52 = vand.u32 4294901760, %v738_v31  ;;  %v3684_v4 = vand.u32 4294901760, %v392_v49  ;;  %v2799_v43 = vpack.c.bf16 %v4455_v25, %v4454_v38  ;;  %v4456_v35 = vld [vmem:[#allocation19_spill] sm:$0xff] }
  0x5b   :  { %719 = vmatprep.mubr.f32.mxu0 %v718_v57  ;;  %4451 = vst [vmem:[#allocation63_spill] sm:$0xff] %v3676_v41  ;;  %1116 = vmatprep.mubr.f32.mxu1 %v3575_v30  ;;  %4452 = vst [vmem:[#allocation64_spill] sm:$0xff] %v3680_v54  ;;  %v3682_v57 = vand.u32 4294901760, %v393_v59  ;;  %v4351_v23 = vand.u32 4294901760, %v3676_v41  ;;  %v4356_v31 = vand.u32 4294901760, %v3680_v54  ;;  %v411_v30 = vcombine.high %v2965_v42, %v2966_v33 }
  0x5c   :  { %2798 = vmatprep.subr.bf16.mxu0 %v2797_v58  ;;  %2836 = vmatpush3.bf16.msra.mxu1 %v4456_v35  ;;  %v3697_v58 = vsub.f32 %v392_v49, %v3684_v4  ;;  %v2969_v49 = vld.sshfl [vmem:[%s4208_s0 + $0xe0] sm:$0xff pattern:$0x76325410] }
  0x5d   :  { %4453 = vst [vmem:[#allocation65_spill] sm:$0xff] %v3682_v57  ;;  %2838 = vmatprep.subr.bf16.mxu1 %v4457_v18  ;;  %v3694_v10 = vsub.f32 %v393_v59, %v3682_v57  ;;  %v753_v35 = vsub.f32 %v3680_v54, %v4356_v31  ;;  %v3706_v42 = vand.u32 4294901760, %v411_v30  ;;  %2800 = vmatpush3.bf16.msra.mxu0 %v2799_v43  ;;  %v2970_v18 = vld.sshfl [vmem:[%s4208_s0 + $0xe8] sm:$0xff pattern:$0x76325410] }
  0x5e   :  { %725 = vmatmul.mubr.f32.gmra.mrb[16].mxu0 %v724_v3  ;;  %1118 = vmatmul.mubr.f32.gmra.mrb[16].mxu1 %v3577_v1  ;;  %4459 = vst [vmem:[#allocation15_spill] sm:$0xff] %v3697_v58  ;;  %v747_v3 = vsub.f32 %v3676_v41, %v4351_v23  ;;  %v4362_v33 = vand.u32 4294901760, %v3697_v58  ;;  %v429_v23 = vcombine.high %v2967_v16, %v2968_v32  ;;  %v4460_v41 = vld [vmem:[#allocation22_spill] sm:$0xff] }
  0x5f   :  { %734 = vmatprep.mubr.f32.mxu0 %v733_v36  ;;  %4458 = vst [vmem:[#allocation14_spill] sm:$0xff] %v3694_v10  ;;  %1123 = vmatprep.mubr.f32.mxu1 %v3610_v5  ;;  %v3708_v36 = vand.u32 4294901760, %v410_v12  ;;  %v4361_v59 = vand.u32 4294901760, %v3694_v10  ;;  %v428_v1 = vcombine.low %v2967_v16, %v2968_v32  ;;  %v754_v5 = vand.u32 4294901760, %v753_v35 }
  0x60   :  { %2840 = vmatpush3.bf16.msra.mxu1 %v4460_v41  ;;  %v748_v31 = vand.u32 4294901760, %v747_v3  ;;  %v3717_v54 = vsub.f32 %v411_v30, %v3706_v42  ;;  %v768_v35 = vsub.f32 %v3697_v58, %v4362_v33  ;;  %v3733_v30 = vand.u32 4294901760, %v429_v23  ;;  %v4463_v3 = vld [vmem:[#allocation16_spill] sm:$0xff] }
  0x61   :  { %v3720_v43 = vsub.f32 %v410_v12, %v3708_v36  ;;  %2874 = vmatprep.subr.bf16.mxu1 %v3044_v13  ;;  %v762_v32 = vsub.f32 %v3694_v10, %v4361_v59  ;;  %v3735_v16 = vand.u32 4294901760, %v428_v1  ;;  %v4464_v59 = vld [vmem:[#allocation18_spill] sm:$0xff] }
  0x62   :  { %740 = vmatmul.mubr.f32.gmra.mrb[18].mxu0 %v739_v52  ;;  %4461 = vst [vmem:[#allocation66_spill] sm:$0xff] %v3717_v54  ;;  %1125 = vmatmul.mubr.f32.gmra.mrb[18].mxu1 %v3612_v55  ;;  %v2971_v52 = vld.sshfl [vmem:[%s4208_s0 + $0xf0] sm:$0xff pattern:$0x76325410]  ;;  %v2801_v33 = vpack.c.bf16 %v4464_v59, %v4463_v3  ;;  %v3746_v55 = vsub.f32 %v429_v23, %v3733_v30  ;;  %v769_v13 = vand.u32 4294901760, %v768_v35 }
  0x63   :  { %4462 = vst [vmem:[#allocation67_spill] sm:$0xff] %v3720_v43  ;;  %749 = vmatprep.mubr.f32.mxu0 %v748_v31  ;;  %1130 = vmatprep.mubr.f32.mxu1 %v3664_v37  ;;  %v763_v58 = vand.u32 4294901760, %v762_v32  ;;  %v3749_v10 = vsub.f32 %v428_v1, %v3735_v16  ;;  %v2972_v31 = vld.sshfl [vmem:[%s4208_s0 + $0xf8] sm:$0xff pattern:$0x76325410]  ;;  %v4467_v37 = vand.u32 4294901760, %v3717_v54 }
  0x64   :  { %4465 = vst [vmem:[#allocation16_spill] sm:$0xff] %v3746_v55  ;;  %v4468_v41 = vand.u32 4294901760, %v3720_v43  ;;  %2802 = vmatprep.subr.bf16.mxu0 %v2801_v33  ;;  %v4378_v1 = vand.u32 4294901760, %v3746_v55  ;;  %v2805_v33 = vpack.c.bf16 %v3299_v51, %v3293_v9 }
  0x65   :  { %4466 = vst [vmem:[#allocation18_spill] sm:$0xff] %v3749_v10  ;;  %v777_v12 = vsub.f32 %v3717_v54, %v4467_v37  ;;  %v4383_v23 = vand.u32 4294901760, %v3749_v10  ;;  %v447_v37 = vcombine.high %v2969_v49, %v2970_v18  ;;  %v446_v54 = vcombine.low %v2969_v49, %v2970_v18  ;;  %v4469_v49 = vld [vmem:[#allocation9_spill] sm:$0xff] }
  0x66   :  { %755 = vmatmul.mubr.f32.gmra.mrb[20].mxu0 %v754_v5  ;;  %v783_v32 = vsub.f32 %v3720_v43, %v4468_v41  ;;  %1132 = vmatmul.mubr.f32.gmra.mrb[20].mxu1 %v3666_v21  ;;  %v2803_v5 = vpack.c.bf16 %v3282_v2, %v3272_v11  ;;  %v792_v41 = vsub.f32 %v3746_v55, %v4378_v1 }
  0x67   :  { %764 = vmatprep.mubr.f32.mxu0 %v763_v58  ;;  %v778_v35 = vand.u32 4294901760, %v777_v12  ;;  %1137 = vmatprep.mubr.f32.mxu1 %v3682_v57  ;;  %v798_v58 = vsub.f32 %v3749_v10, %v4383_v23  ;;  %v3774_v21 = vand.u32 4294901760, %v447_v37  ;;  %v3776_v12 = vand.u32 4294901760, %v446_v54  ;;  %v4471_v57 = vld [vmem:[#allocation10_spill] sm:$0xff] }
  0x68   :  { %v784_v47 = vand.u32 4294901760, %v783_v32  ;;  %2804 = vmatpush3.bf16.msra.mxu0 %v2803_v5  ;;  %v2807_v18 = vpack.c.bf16 %v3321_v34, %v3313_v8  ;;  %v4470_v32 = vand.u32 4294901760, %v4469_v49  ;;  %v4472_v1 = vand.u32 4294901760, %v4471_v57 }
  0x69   :  { %v793_v43 = vand.u32 4294901760, %v792_v41  ;;  %v465_v5 = vcombine.high %v2971_v52, %v2972_v31  ;;  %v464_v23 = vcombine.low %v2971_v52, %v2972_v31  ;;  %v3790_v10 = vsub.f32 %v446_v54, %v3776_v12  ;;  %2806 = vmatprep.subr.bf16.mxu0 %v2805_v33 }
  0x6a   :  { %770 = vmatmul.mubr.f32.gmra.mrb[22].mxu0 %v769_v13  ;;  %v2841_v55 = vpack.c.bf16 %v4472_v1, %v4470_v32  ;;  %1139 = vmatmul.mubr.f32.gmra.mrb[22].mxu1 %v3684_v4  ;;  %v3786_v13 = vsub.f32 %v447_v37, %v3774_v21  ;;  %v799_v57 = vand.u32 4294901760, %v798_v58  ;;  %v4473_v33 = vand.u32 4294901760, %v3313_v8  ;;  %v4478_v8 = vld [vmem:[#allocation7_spill] sm:$0xff] }
  0x6b   :  { %779 = vmatprep.mubr.f32.mxu0 %v778_v35  ;;  %1144 = vmatprep.mubr.f32.mxu1 %v3706_v42  ;;  %v3792_v51 = vand.u32 4294901760, %v465_v5  ;;  %v3794_v49 = vand.u32 4294901760, %v464_v23  ;;  %v812_v52 = vand.u32 4294901760, %v3790_v10 }
  0x6c   :  { %2808 = vmatpush3.bf16.msra.mxu0 %v2807_v18  ;;  %v806_v1 = vand.u32 4294901760, %v3786_v13  ;;  %v4474_v18 = vand.u32 4294901760, %v3321_v34 }
  0x6d   :  { %2842 = vmatprep.subr.bf16.mxu0 %v2841_v55  ;;  %v3800_v31 = vsub.f32 %v465_v5, %v3792_v51  ;;  %v3803_v54 = vsub.f32 %v464_v23, %v3794_v49 }
  0x6e   :  { %785 = vmatmul.mubr.f32.gmra.mrb[24].mxu0 %v784_v47  ;;  %1146 = vmatmul.mubr.f32.gmra.mrb[24].mxu1 %v3708_v36  ;;  %v807_v35 = vsub.f32 %v3786_v13, %v806_v1  ;;  %v813_v47 = vsub.f32 %v3790_v10, %v812_v52  ;;  %v3826_v32 = vpack.c.bf16 %v4474_v18, %v4473_v33  ;;  %v4483_v18 = vld [vmem:[#allocation28_spill] sm:$0xff] }
  0x6f   :  { %794 = vmatprep.mubr.f32.mxu0 %v793_v43  ;;  %1151 = vmatprep.mubr.f32.mxu1 %v3733_v30  ;;  %v4388_v55 = vand.u32 4294901760, %v3800_v31  ;;  %v4387_v43 = vand.u32 4294901760, %v3803_v54 }
  0x70   :  { %v808_v37 = vand.u32 4294901760, %v807_v35  ;;  %v814_v41 = vand.u32 4294901760, %v813_v47  ;;  %v4475_v35 = vld [vmem:[#allocation27_spill] sm:$0xff]  ;;  %v4476_v47 = vld [vmem:[#allocation6_spill] sm:$0xff] }
  0x71   :  { %v822_v23 = vsub.f32 %v3800_v31, %v4388_v55  ;;  %v828_v58 = vsub.f32 %v3803_v54, %v4387_v43  ;;  %v4479_v43 = vand.u32 4294901760, %v4478_v8  ;;  %v4480_v33 = vand.u32 4294901760, %v4475_v35 }
  0x72   :  { %800 = vmatmul.mubr.f32.gmra.mrb[26].mxu0 %v799_v57  ;;  %1153 = vmatmul.mubr.f32.gmra.mrb[26].mxu1 %v3735_v16  ;;  %v4493_v8 = vand.u32 4294901760, %v3100_v45  ;;  %v4500_v45 = vld [vmem:[#allocation11_spill] sm:$0xff] }
  0x73   :  { %809 = vmatprep.mubr.f32.mxu0 %v808_v37  ;;  %1158 = vmatprep.mubr.f32.mxu1 %v3774_v21  ;;  %v823_v5 = vand.u32 4294901760, %v822_v23  ;;  %v829_v57 = vand.u32 4294901760, %v828_v58  ;;  %v4477_v37 = vand.u32 4294901760, %v4476_v47  ;;  %v4482_v23 = vand.u32 4294901760, %v3069_v26 }
  0x74   :  { %v4486_v47 = vand.u32 4294901760, %v3076_v29  ;;  %v4492_v29 = vld [vmem:[#allocation32_spill] sm:$0xff] }
  0x75   :  { %v2843_v34 = vpack.c.bf16 %v4479_v43, %v4477_v37  ;;  %v4487_v43 = vand.u32 4294901760, %v4483_v18 }
  0x76   :  { %815 = vmatmul.mubr.f32.gmra.mrb[28].mxu0 %v814_v41  ;;  %1160 = vmatmul.mubr.f32.gmra.mrb[28].mxu1 %v3776_v12  ;;  %v4481_v41 = vand.u32 4294901760, %v3058_v22  ;;  %v4489_v22 = vand.u32 4294901760, %v3091_v40  ;;  %v4495_v40 = vand.u32 4294901760, %v3395_v61 }
  0x77   :  { %824 = vmatprep.mubr.f32.mxu0 %v823_v5  ;;  %1165 = vmatprep.mubr.f32.mxu1 %v3792_v51  ;;  %v4484_v5 = vld [vmem:[#allocation29_spill] sm:$0xff] }
  0x78   :  { %v2845_v58 = vpack.c.bf16 %v4482_v23, %v4481_v41  ;;  %v4490_v37 = vand.u32 4294901760, %v4484_v5  ;;  %v4498_v23 = vand.u32 4294901760, %v4492_v29 }
  0x7a   :  { %830 = vmatmul.mubr.f32.gmra.mrb[30].mxu0 %v829_v57  ;;  %1167 = vmatmul.mubr.f32.gmra.mrb[30].mxu1 %v3794_v49  ;;  %v4485_v57 = vand.u32 4294901760, %v3073_v28  ;;  %v4491_v28 = vld [vmem:[#allocation8_spill] sm:$0xff] }
  0x7b   :  { %1302 = vmatprep.mubr.f32.mxu0 %v4475_v35  ;;  %1544 = vmatprep.mubr.f32.mxu1 %v4480_v33  ;;  %v4488_v35 = vand.u32 4294901760, %v3089_v39  ;;  %v4497_v33 = vand.u32 4294901760, %v3131_v63 }
  0x7c   :  { %v2847_v55 = vpack.c.bf16 %v4486_v47, %v4485_v57  ;;  %v4508_v47 = vld [vmem:[#allocation37_spill] sm:$0xff] }
  0x7d   :  { %v2849_v26 = vpack.c.bf16 %v4489_v22, %v4488_v35  ;;  %v4513_v35 = vand.u32 4294901760, %v3209_v24 }
  0x7e   :  { %1305 = vmatmul.mubr.f32.vlgmr.msra.gmra.mrb[32].mxu0 %v4483_v18  ;;  %1548 = vmatmul.mubr.f32.vlgmr.msra.gmra.mrb[32].mxu1 %v4487_v43  ;;  %v4505_v18 = vand.u32 4294901760, %v3173_v50  ;;  %v4511_v43 = vand.u32 4294901760, %v3195_v7  ;;  %v4518_v7 = vand.u32 4294901760, %v4455_v25  ;;  %v4525_v25 = vld [vmem:[#allocation47_spill] sm:$0xff] }
  0x7f   :  { %1311 = vmatprep.mubr.f32.mxu0 %v4484_v5  ;;  %2844 = vmatpush3.bf16.msra.mxu0 %v2843_v34  ;;  %v4494_v34 = vand.u32 4294901760, %v3102_v46  ;;  %v4501_v46 = vld [vmem:[#allocation36_spill] sm:$0xff] }
  0x80   :  { %2846 = vmatprep.subr.bf16.mxu0 %v2845_v58  ;;  %2876 = vmatpush3.bf16.msra.mxu1 %v3052_v19  ;;  %v4496_v19 = vand.u32 4294901760, %v3127_v60  ;;  %v4503_v58 = vand.u32 4294901760, %v3156_v17  ;;  %v4507_v57 = vand.u32 4294901760, %v4501_v46  ;;  %v4510_v17 = vand.u32 4294901760, %v3188_v0 }
  0x81   :  { %1555 = vmatprep.mubr.f32.mxu1 %v4490_v37  ;;  %2878 = vmatprep.subr.bf16.mxu1 %v4491_v28  ;;  %v2851_v39 = vpack.c.bf16 %v4494_v34, %v4493_v8  ;;  %v4517_v0 = vand.u32 4294901760, %v4454_v38  ;;  %v4520_v37 = vand.u32 4294901760, %v4463_v3  ;;  %v4524_v38 = vld [vmem:[#allocation12_spill] sm:$0xff]  ;;  %v4526_v8 = vand.u32 4294901760, %v3272_v11  ;;  %v4535_v11 = vld [vmem:[#allocation17_spill] sm:$0xff] }
  0x82   :  { %1314 = vmatmul.mubr.f32.gmra.mrb[34].mxu0 %v3395_v61  ;;  %1559 = vmatmul.mubr.f32.gmra.mrb[34].mxu1 %v4495_v40  ;;  %v2853_v41 = vpack.c.bf16 %v4497_v33, %v4496_v19  ;;  %v4502_v61 = vand.u32 4294901760, %v3151_v15  ;;  %v4509_v15 = vld [vmem:[#allocation41_spill] sm:$0xff]  ;;  %v2859_v50 = vpack.c.bf16 %v4511_v43, %v4510_v17  ;;  %v4527_v34 = vand.u32 4294901760, %v3282_v2  ;;  %v4554_v43 = vld [vmem:[#allocation64_spill] sm:$0xff] }
  0x83   :  { %1320 = vmatprep.mubr.f32.mxu0 %v4492_v29  ;;  %2848 = vmatpush3.bf16.msra.mxu0 %v2847_v55  ;;  %v4499_v55 = vld [vmem:[#allocation33_spill] sm:$0xff]  ;;  %v2863_v24 = vpack.c.bf16 %v4518_v7, %v4517_v0  ;;  %v4522_v29 = vand.u32 4294901760, %v3504_v20  ;;  %v4532_v19 = vand.u32 4294901760, %v4525_v25  ;;  %v4562_v0 = vld [vmem:[#allocation67_spill] sm:$0xff]  ;;  %v4563_v7 = vld [vmem:[#allocation16_spill] sm:$0xff] }
  0x84   :  { %2850 = vmatprep.subr.bf16.mxu0 %v2849_v26  ;;  %1566 = vmatprep.mubr.f32.mxu1 %v4498_v23  ;;  %v2855_v60 = vpack.c.bf16 %v4503_v58, %v4502_v61  ;;  %v4504_v63 = vand.u32 4294901760, %v4499_v55  ;;  %v4515_v26 = vand.u32 4294901760, %v4509_v15  ;;  %v2867_v3 = vpack.c.bf16 %v4527_v34, %v4526_v8  ;;  %v4533_v33 = vld [vmem:[#allocation13_spill] sm:$0xff]  ;;  %v4542_v61 = vld [vmem:[#allocation55_spill] sm:$0xff]  ;;  %v4580_v34 = vld [vmem:[#allocation40_spill] sm:$0xff] }
  0x85   :  { %2880 = vmatpush3.bf16.msra.mxu1 %v3071_v27  ;;  %v4506_v27 = vand.u32 4294901760, %v3180_v56  ;;  %v4512_v56 = vand.u32 4294901760, %v4508_v47  ;;  %v4536_v2 = vld [vmem:[#allocation53_spill] sm:$0xff]  ;;  %v4579_v8 = vld [vmem:[#allocation39_spill] sm:$0xff] }
  0x86   :  { %1323 = vmatmul.mubr.f32.gmra.mrb[36].mxu0 %v4499_v55  ;;  %2882 = vmatprep.subr.bf16.mxu1 %v4500_v45  ;;  %v4539_v55 = vld [vmem:[#allocation19_spill] sm:$0xff]  ;;  %v4540_v45 = vld [vmem:[#allocation54_spill] sm:$0xff] }
  0x87   :  { %1329 = vmatprep.mubr.f32.mxu0 %v4501_v46  ;;  %2852 = vmatpush3.bf16.msra.mxu0 %v2851_v39  ;;  %v2857_v5 = vpack.c.bf16 %v4506_v27, %v4505_v18  ;;  %v4530_v39 = vld [vmem:[#allocation21_spill] sm:$0xff]  ;;  %v4541_v46 = vld [vmem:[#allocation20_spill] sm:$0xff]  ;;  %v4543_v58 = vand.u32 4294901760, %v4540_v45  ;;  %v4547_v27 = vld [vmem:[#allocation59_spill] sm:$0xff] }
  0x88   :  { %1570 = vmatmul.mubr.f32.gmra.mrb[36].mxu1 %v4504_v63  ;;  %2854 = vmatprep.subr.bf16.mxu0 %v2853_v41  ;;  %v4534_v41 = vld [vmem:[#allocation48_spill] sm:$0xff]  ;;  %v4545_v63 = vld [vmem:[#allocation22_spill] sm:$0xff] }
  0x89   :  { %1577 = vmatprep.mubr.f32.mxu1 %v4507_v57  ;;  %2884 = vmatpush3.bf16.msra.mxu1 %v3098_v44  ;;  %v4514_v44 = vand.u32 4294901760, %v3218_v48  ;;  %v4537_v23 = vand.u32 4294901760, %v4534_v41  ;;  %v4546_v18 = vld [vmem:[#allocation56_spill] sm:$0xff]  ;;  %v4549_v57 = vand.u32 4294901760, %v4547_v27 }
  0x8a   :  { %1332 = vmatmul.mubr.f32.gmra.mrb[38].mxu0 %v4508_v47  ;;  %2886 = vmatprep.subr.bf16.mxu1 %v3129_v62  ;;  %v4516_v62 = vld [vmem:[#allocation42_spill] sm:$0xff]  ;;  %v4550_v47 = vld [vmem:[#allocation60_spill] sm:$0xff] }
  0x8b   :  { %1338 = vmatprep.mubr.f32.mxu0 %v4509_v15  ;;  %2856 = vmatpush3.bf16.msra.mxu0 %v2855_v60  ;;  %v2861_v22 = vpack.c.bf16 %v4514_v44, %v4513_v35  ;;  %v4519_v48 = vand.u32 4294901760, %v4516_v62  ;;  %v4544_v60 = vand.u32 4294901760, %v4542_v61  ;;  %v4552_v15 = vand.u32 4294901760, %v4550_v47  ;;  %v4558_v44 = vld [vmem:[#allocation15_spill] sm:$0xff] }
  0x8c   :  { %1581 = vmatmul.mubr.f32.gmra.mrb[38].mxu1 %v4512_v56  ;;  %2858 = vmatprep.subr.bf16.mxu0 %v2857_v5  ;;  %v4548_v5 = vand.u32 4294901760, %v4546_v18  ;;  %v4556_v56 = vand.u32 4294901760, %v4554_v43 }
  0x8d   :  { %1588 = vmatprep.mubr.f32.mxu1 %v4515_v26  ;;  %2888 = vmatpush3.bf16.msra.mxu1 %v3149_v14  ;;  %v4521_v14 = vand.u32 4294901760, %v4464_v59  ;;  %v4560_v26 = vand.u32 4294901760, %v4558_v44 }
  0x8e   :  { %1341 = vmatmul.mubr.f32.gmra.mrb[40].mxu0 %v4516_v62  ;;  %2890 = vmatprep.subr.bf16.mxu1 %v3178_v53  ;;  %v4523_v53 = vld [vmem:[#allocation44_spill] sm:$0xff] }
  0x8f   :  { %1347 = vmatprep.mubr.f32.mxu0 %v3504_v20  ;;  %2860 = vmatpush3.bf16.msra.mxu0 %v2859_v50  ;;  %v2865_v28 = vpack.c.bf16 %v4521_v14, %v4520_v37  ;;  %v4528_v59 = vand.u32 4294901760, %v4523_v53  ;;  %v4529_v20 = vand.u32 4294901760, %v3293_v9  ;;  %v4538_v9 = vand.u32 4294901760, %v4536_v2  ;;  %v4555_v50 = vld [vmem:[#allocation14_spill] sm:$0xff] }
  0x90   :  { %1592 = vmatmul.mubr.f32.gmra.mrb[40].mxu1 %v4519_v48  ;;  %2862 = vmatprep.subr.bf16.mxu0 %v2861_v22  ;;  %v4557_v35 = vand.u32 4294901760, %v4555_v50  ;;  %v4559_v22 = vld [vmem:[#allocation66_spill] sm:$0xff]  ;;  %v4565_v48 = vand.u32 4294901760, %v4563_v7 }
  0x91   :  { %1599 = vmatprep.mubr.f32.mxu1 %v4522_v29  ;;  %2892 = vmatpush3.bf16.msra.mxu1 %v3193_v6  ;;  %v4531_v6 = vand.u32 4294901760, %v4530_v39  ;;  %v4561_v62 = vand.u32 4294901760, %v4559_v22  ;;  %v4566_v37 = vld [vmem:[#allocation18_spill] sm:$0xff]  ;;  %v4569_v29 = vld [vmem:[#allocation23_spill] sm:$0xff]  ;;  %v4584_v39 = vld [vmem:[#allocation49_spill] sm:$0xff] }
  0x92   :  { %1350 = vmatmul.mubr.f32.gmra.mrb[42].mxu0 %v4523_v53  ;;  %2894 = vmatprep.subr.bf16.mxu1 %v4524_v38  ;;  %v4567_v14 = vand.u32 4294901760, %v4566_v37  ;;  %v4570_v53 = vand.u32 4294901760, %v3803_v54  ;;  %v4577_v38 = vld [vmem:[#allocation35_spill] sm:$0xff] }
  0x93   :  { %1356 = vmatprep.mubr.f32.mxu0 %v4525_v25  ;;  %2864 = vmatpush3.bf16.msra.mxu0 %v2863_v24  ;;  %v2869_v40 = vpack.c.bf16 %v4531_v6, %v4529_v20  ;;  %v4564_v24 = vand.u32 4294901760, %v4562_v0  ;;  %v4578_v25 = vld [vmem:[#allocation38_spill] sm:$0xff] }
  0x94   :  { %1603 = vmatmul.mubr.f32.gmra.mrb[42].mxu1 %v4528_v59  ;;  %2866 = vmatprep.subr.bf16.mxu0 %v2865_v28  ;;  %v4568_v28 = vand.u32 4294901760, %v3800_v31  ;;  %v4582_v59 = vld [vmem:[#allocation45_spill] sm:$0xff]  ;;  %v4583_v20 = vld [vmem:[#allocation46_spill] sm:$0xff] }
  0x95   :  { %1610 = vmatprep.mubr.f32.mxu1 %v4532_v19  ;;  %2896 = vmatpush3.bf16.msra.mxu1 %v4533_v33  ;;  %v4585_v6 = vld [vmem:[#allocation50_spill] sm:$0xff]  ;;  %v4587_v19 = vld [vmem:[#allocation52_spill] sm:$0xff]  ;;  %v4588_v33 = vld [vmem:[#allocation57_spill] sm:$0xff] }
  0x96   :  { %1359 = vmatmul.mubr.f32.gmra.mrb[44].mxu0 %v4534_v41  ;;  %2898 = vmatprep.subr.bf16.mxu1 %v4535_v11  ;;  %v4589_v41 = vld [vmem:[#allocation58_spill] sm:$0xff]  ;;  %v4590_v11 = vld [vmem:[#allocation61_spill] sm:$0xff] }
  0x97   :  { %1365 = vmatprep.mubr.f32.mxu0 %v4536_v2  ;;  %2868 = vmatpush3.bf16.msra.mxu0 %v2867_v3  ;;  %v4581_v3 = vld [vmem:[#allocation43_spill] sm:$0xff]  ;;  %v4591_v2 = vld [vmem:[#allocation62_spill] sm:$0xff] }
  0x98   :  { %1614 = vmatmul.mubr.f32.gmra.mrb[44].mxu1 %v4537_v23  ;;  %2870 = vmatprep.subr.bf16.mxu0 %v2869_v40  ;;  %v4586_v40 = vld [vmem:[#allocation51_spill] sm:$0xff]  ;;  %v4592_v23 = vld [vmem:[#allocation65_spill] sm:$0xff] }
  0x99   :  { %1621 = vmatprep.mubr.f32.mxu1 %v4538_v9  ;;  %2900 = vmatpush3.bf16.msra.mxu1 %v4539_v55 }
  0x9a   :  { %1368 = vmatmul.mubr.f32.gmra.mrb[46].mxu0 %v4540_v45  ;;  %2902 = vmatprep.subr.bf16.mxu1 %v4541_v46 }
  0x9b   :  { %1374 = vmatprep.mubr.f32.mxu0 %v4542_v61  ;;  %2872 = vmatpush3.bf16.msra.mxu0 %v3826_v32  ;;  %v4551_v32 = vld [vmem:[#allocation63_spill] sm:$0xff] }
  0x9c   :  { %1625 = vmatmul.mubr.f32.gmra.mrb[46].mxu1 %v4543_v58  ;;  %v4553_v17 = vand.u32 4294901760, %v4551_v32 }
  0x9d   :  { %1632 = vmatprep.mubr.f32.mxu1 %v4544_v60  ;;  %2904 = vmatpush3.bf16.msra.mxu1 %v4545_v63 }
  0x9e   :  { %1377 = vmatmul.mubr.f32.gmra.mrb[48].mxu0 %v4546_v18 }
  0x9f   :  { %1383 = vmatprep.mubr.f32.mxu0 %v4547_v27 }
  0xa0   :  { %1636 = vmatmul.mubr.f32.gmra.mrb[48].mxu1 %v4548_v5 }
  0xa1   :  { %1643 = vmatprep.mubr.f32.mxu1 %v4549_v57 }
  0xa2   :  { %1386 = vmatmul.mubr.f32.gmra.mrb[50].mxu0 %v4550_v47 }
  0xa3   :  { %1392 = vmatprep.mubr.f32.mxu0 %v4551_v32 }
  0xa4   :  { %1647 = vmatmul.mubr.f32.gmra.mrb[50].mxu1 %v4552_v15 }
  0xa5   :  { %1654 = vmatprep.mubr.f32.mxu1 %v4553_v17 }
  0xa6   :  { %1395 = vmatmul.mubr.f32.gmra.mrb[52].mxu0 %v4554_v43 }
  0xa7   :  { %1401 = vmatprep.mubr.f32.mxu0 %v4555_v50 }
  0xa8   :  { %1658 = vmatmul.mubr.f32.gmra.mrb[52].mxu1 %v4556_v56 }
  0xa9   :  { %1665 = vmatprep.mubr.f32.mxu1 %v4557_v35 }
  0xaa   :  { %1404 = vmatmul.mubr.f32.gmra.mrb[54].mxu0 %v4558_v44 }
  0xab   :  { %1410 = vmatprep.mubr.f32.mxu0 %v4559_v22 }
  0xac   :  { %1669 = vmatmul.mubr.f32.gmra.mrb[54].mxu1 %v4560_v26 }
  0xad   :  { %1676 = vmatprep.mubr.f32.mxu1 %v4561_v62 }
  0xae   :  { %1413 = vmatmul.mubr.f32.gmra.mrb[56].mxu0 %v4562_v0 }
  0xaf   :  { %1419 = vmatprep.mubr.f32.mxu0 %v4563_v7 }
  0xb0   :  { %1680 = vmatmul.mubr.f32.gmra.mrb[56].mxu1 %v4564_v24 }
  0xb1   :  { %1687 = vmatprep.mubr.f32.mxu1 %v4565_v48 }
  0xb2   :  { %1422 = vmatmul.mubr.f32.gmra.mrb[58].mxu0 %v4566_v37 }
  0xb3   :  { %1428 = vmatprep.mubr.f32.mxu0 %v3786_v13  ;;  %v4571_v13 = vld [vmem:[#allocation24_spill] sm:$0xff] }
  0xb4   :  { %1691 = vmatmul.mubr.f32.gmra.mrb[58].mxu1 %v4567_v14 }
  0xb5   :  { %1698 = vmatprep.mubr.f32.mxu1 %v806_v1  ;;  %v4572_v1 = vld [vmem:[#allocation25_spill] sm:$0xff] }
  0xb6   :  { %1431 = vmatmul.mubr.f32.gmra.mrb[60].mxu0 %v3790_v10  ;;  %v4573_v10 = vld [vmem:[#allocation26_spill] sm:$0xff] }
  0xb7   :  { %1437 = vmatprep.mubr.f32.mxu0 %v3800_v31  ;;  %v4575_v31 = vld [vmem:[#allocation31_spill] sm:$0xff] }
  0xb8   :  { %1702 = vmatmul.mubr.f32.gmra.mrb[60].mxu1 %v812_v52  ;;  %v4574_v52 = vld [vmem:[#allocation30_spill] sm:$0xff] }
  0xb9   :  { %1709 = vmatprep.mubr.f32.mxu1 %v4568_v28 }
  0xba   :  { %1440 = vmatmul.mubr.f32.gmra.mrb[62].mxu0 %v3803_v54  ;;  %v4576_v54 = vld [vmem:[#allocation34_spill] sm:$0xff] }
  0xbb   :  { %1879 = vmatprep.mubr.f32.mxu0 %v4569_v29 }
  0xbc   :  { %1713 = vmatmul.mubr.f32.gmra.mrb[62].mxu1 %v4570_v53 }
  0xbd   :  { %2088 = vmatprep.mubr.f32.mxu1 %v4569_v29 }
  0xbe   :  { %1881 = vmatmul.mubr.f32.vlgmr.msra.gmra.mrb[64].mxu0 %v4571_v13 }
  0xbf   :  { %1886 = vmatprep.mubr.f32.mxu0 %v4572_v1 }
  0xc0   :  { %2090 = vmatmul.mubr.f32.vlgmr.msra.gmra.mrb[64].mxu1 %v4571_v13 }
  0xc1   :  { %2095 = vmatprep.mubr.f32.mxu1 %v4572_v1 }
  0xc2   :  { %1888 = vmatmul.mubr.f32.gmra.mrb[66].mxu0 %v4573_v10 }
  0xc3   :  { %1893 = vmatprep.mubr.f32.mxu0 %v4574_v52 }
  0xc4   :  { %2097 = vmatmul.mubr.f32.gmra.mrb[66].mxu1 %v4573_v10 }
  0xc5   :  { %2102 = vmatprep.mubr.f32.mxu1 %v4574_v52 }
  0xc6   :  { %1895 = vmatmul.mubr.f32.gmra.mrb[68].mxu0 %v4575_v31 }
  0xc7   :  { %1900 = vmatprep.mubr.f32.mxu0 %v4576_v54 }
  0xc8   :  { %2104 = vmatmul.mubr.f32.gmra.mrb[68].mxu1 %v4575_v31 }
  0xc9   :  { %2109 = vmatprep.mubr.f32.mxu1 %v4576_v54 }
  0xca   :  { %1902 = vmatmul.mubr.f32.gmra.mrb[70].mxu0 %v4577_v38 }
  0xcb   :  { %1907 = vmatprep.mubr.f32.mxu0 %v4578_v25 }
  0xcc   :  { %2111 = vmatmul.mubr.f32.gmra.mrb[70].mxu1 %v4577_v38 }
  0xcd   :  { %2116 = vmatprep.mubr.f32.mxu1 %v4578_v25 }
  0xce   :  { %1909 = vmatmul.mubr.f32.gmra.mrb[72].mxu0 %v4579_v8 }
  0xcf   :  { %1914 = vmatprep.mubr.f32.mxu0 %v4580_v34 }
  0xd0   :  { %2118 = vmatmul.mubr.f32.gmra.mrb[72].mxu1 %v4579_v8 }
  0xd1   :  { %2123 = vmatprep.mubr.f32.mxu1 %v4580_v34 }
  0xd2   :  { %1916 = vmatmul.mubr.f32.gmra.mrb[74].mxu0 %v4581_v3 }
  0xd3   :  { %1921 = vmatprep.mubr.f32.mxu0 %v4582_v59 }
  0xd4   :  { %2125 = vmatmul.mubr.f32.gmra.mrb[74].mxu1 %v4581_v3 }
  0xd5   :  { %2130 = vmatprep.mubr.f32.mxu1 %v4582_v59 }
  0xd6   :  { %1923 = vmatmul.mubr.f32.gmra.mrb[76].mxu0 %v4583_v20 }
  0xd7   :  { %1928 = vmatprep.mubr.f32.mxu0 %v4584_v39 }
  0xd8   :  { %2132 = vmatmul.mubr.f32.gmra.mrb[76].mxu1 %v4583_v20 }
  0xd9   :  { %2137 = vmatprep.mubr.f32.mxu1 %v4584_v39 }
  0xda   :  { %1930 = vmatmul.mubr.f32.gmra.mrb[78].mxu0 %v4585_v6 }
  0xdb   :  { %1935 = vmatprep.mubr.f32.mxu0 %v4586_v40 }
  0xdc   :  { %2139 = vmatmul.mubr.f32.gmra.mrb[78].mxu1 %v4585_v6 }
  0xdd   :  { %2144 = vmatprep.mubr.f32.mxu1 %v4586_v40 }
  0xde   :  { %1937 = vmatmul.mubr.f32.gmra.mrb[80].mxu0 %v4587_v19 }
  0xdf   :  { %1942 = vmatprep.mubr.f32.mxu0 %v4588_v33 }
  0xe0   :  { %2146 = vmatmul.mubr.f32.gmra.mrb[80].mxu1 %v4587_v19 }
  0xe1   :  { %2151 = vmatprep.mubr.f32.mxu1 %v4588_v33 }
  0xe2   :  { %1944 = vmatmul.mubr.f32.gmra.mrb[82].mxu0 %v4589_v41 }
  0xe3   :  { %1949 = vmatprep.mubr.f32.mxu0 %v4590_v11 }
  0xe4   :  { %2153 = vmatmul.mubr.f32.gmra.mrb[82].mxu1 %v4589_v41 }
  0xe5   :  { %2158 = vmatprep.mubr.f32.mxu1 %v4590_v11 }
  0xe6   :  { %1951 = vmatmul.mubr.f32.gmra.mrb[84].mxu0 %v4591_v2 }
  0xe7   :  { %1956 = vmatprep.mubr.f32.mxu0 %v4592_v23 }
  0xe8   :  { %2160 = vmatmul.mubr.f32.gmra.mrb[84].mxu1 %v4591_v2 }
  0xe9   :  { %2165 = vmatprep.mubr.f32.mxu1 %v4592_v23 }
  0xea   :  { %1958 = vmatmul.mubr.f32.gmra.mrb[86].mxu0 %v3684_v4 }
  0xeb   :  { %1963 = vmatprep.mubr.f32.mxu0 %v3706_v42 }
  0xec   :  { %2167 = vmatmul.mubr.f32.gmra.mrb[86].mxu1 %v3684_v4 }
  0xed   :  { %2172 = vmatprep.mubr.f32.mxu1 %v3706_v42  ;;  %v4066_v42 = vstv %s4210_s2 }
  0xee   :  { %1965 = vmatmul.mubr.f32.gmra.mrb[88].mxu0 %v3708_v36 }
  0xef   :  { %1970 = vmatprep.mubr.f32.mxu0 %v3733_v30 }
  0xf0   :  { %2174 = vmatmul.mubr.f32.gmra.mrb[88].mxu1 %v3708_v36 }
  0xf1   :  { %2179 = vmatprep.mubr.f32.mxu1 %v3733_v30 }
  0xf2   :  { %1972 = vmatmul.mubr.f32.gmra.mrb[90].mxu0 %v3735_v16 }
  0xf3   :  { %1977 = vmatprep.mubr.f32.mxu0 %v3774_v21 }
  0xf4   :  { %2181 = vmatmul.mubr.f32.gmra.mrb[90].mxu1 %v3735_v16 }
  0xf5   :  { %2186 = vmatprep.mubr.f32.mxu1 %v3774_v21 }
  0xf6   :  { %1979 = vmatmul.mubr.f32.gmra.mrb[92].mxu0 %v3776_v12 }
  0xf7   :  { %1984 = vmatprep.mubr.f32.mxu0 %v3792_v51 }
  0xf8   :  { %2188 = vmatmul.mubr.f32.gmra.mrb[92].mxu1 %v3776_v12 }
  0xf9   :  { %2193 = vmatprep.mubr.f32.mxu1 %v3792_v51 }
  0xfa   :  { %1986 = vmatmul.mubr.f32.gmra.mrb[94].mxu0 %v3794_v49 }
  0xfc   :  { %2195 = vmatmul.mubr.f32.gmra.mrb[94].mxu1 %v3794_v49 }
 0x10f   :  { %v2265_v4 = vpop.f32.mrb[0].mxu0 }
 0x110   :  { %v2266_v36 = vpop.f32.mrb[1].mxu0 }
 0x111   :  { %v2267_v21 = vadd.f32 %v2266_v36, %v2265_v4  ;;  %v2345_v30 = vpop.f32.mrb[0].mxu1 }
 0x112   :  { %v2346_v16 = vpop.f32.mrb[1].mxu1 }
 0x113   :  { %v607_v9 = vadd.f32 %v2267_v21, %v4066_v42  ;;  %v2347_v55 = vadd.f32 %v2346_v16, %v2345_v30  ;;  %v2268_v12 = vpop.f32.mrb[2].mxu0 }
 0x114   :  { %v2269_v45 = vpop.f32.mrb[3].mxu0 }
 0x115   :  { %v4069_v51 = vadd.f32 %v2347_v55, %v607_v9  ;;  %v2270_v46 = vadd.f32 %v2269_v45, %v2268_v12  ;;  %v2348_v61 = vpop.f32.mrb[2].mxu1 }
 0x116   :  { %v2349_v49 = vpop.f32.mrb[3].mxu1 }
 0x117   :  { %v622_v58 = vadd.f32 %v2270_v46, %v4066_v42  ;;  %v2350_v60 = vadd.f32 %v2349_v49, %v2348_v61 }
 0x119   :  { %v2271_v63 = vpop.f32.mrb[4].mxu0  ;;  %v4072_v18 = vadd.f32 %v2350_v60, %v622_v58  ;;  %v2351_v5 = vpop.f32.mrb[4].mxu1 }
 0x11a   :  { %v2272_v27 = vpop.f32.mrb[5].mxu0  ;;  %v2352_v47 = vpop.f32.mrb[5].mxu1 }
 0x11b   :  { %v2273_v57 = vadd.f32 %v2272_v27, %v2271_v63  ;;  %v2353_v32 = vadd.f32 %v2352_v47, %v2351_v5 }
 0x11d   :  { %v637_v15 = vadd.f32 %v2273_v57, %v4066_v42  ;;  %v2274_v17 = vpop.f32.mrb[6].mxu0  ;;  %v2354_v50 = vpop.f32.mrb[6].mxu1 }
 0x11e   :  { %v2275_v43 = vpop.f32.mrb[7].mxu0  ;;  %v2355_v44 = vpop.f32.mrb[7].mxu1 }
 0x11f   :  { %v4075_v56 = vadd.f32 %v2353_v32, %v637_v15  ;;  %v2276_v35 = vadd.f32 %v2275_v43, %v2274_v17  ;;  %v2356_v22 = vadd.f32 %v2355_v44, %v2354_v50 }
 0x121   :  { %v652_v26 = vadd.f32 %v2276_v35, %v4066_v42  ;;  %v2277_v62 = vpop.f32.mrb[8].mxu0  ;;  %v2357_v7 = vpop.f32.mrb[8].mxu1 }
 0x122   :  { %v2278_v0 = vpop.f32.mrb[9].mxu0  ;;  %v2358_v37 = vpop.f32.mrb[9].mxu1 }
 0x123   :  { %v4078_v24 = vadd.f32 %v2356_v22, %v652_v26  ;;  %v2279_v48 = vadd.f32 %v2278_v0, %v2277_v62  ;;  %v2359_v14 = vadd.f32 %v2358_v37, %v2357_v7 }
 0x125   :  { %v667_v28 = vadd.f32 %v2279_v48, %v4066_v42  ;;  %v2280_v29 = vpop.f32.mrb[10].mxu0  ;;  %v2360_v13 = vpop.f32.mrb[10].mxu1 }
 0x126   :  { %v2281_v53 = vpop.f32.mrb[11].mxu0  ;;  %v2361_v52 = vpop.f32.mrb[11].mxu1 }
 0x127   :  { %v4081_v1 = vadd.f32 %v2359_v14, %v667_v28  ;;  %v2282_v10 = vadd.f32 %v2281_v53, %v2280_v29  ;;  %v2362_v31 = vadd.f32 %v2361_v52, %v2360_v13 }
 0x129   :  { %v682_v54 = vadd.f32 %v2282_v10, %v4066_v42  ;;  %v2283_v38 = vpop.f32.mrb[12].mxu0  ;;  %v2363_v8 = vpop.f32.mrb[12].mxu1 }
 0x12a   :  { %v2284_v25 = vpop.f32.mrb[13].mxu0  ;;  %v2364_v59 = vpop.f32.mrb[13].mxu1 }
 0x12b   :  { %v4084_v34 = vadd.f32 %v2362_v31, %v682_v54  ;;  %v2285_v3 = vadd.f32 %v2284_v25, %v2283_v38  ;;  %v2365_v20 = vadd.f32 %v2364_v59, %v2363_v8 }
 0x12d   :  { %v697_v39 = vadd.f32 %v2285_v3, %v4066_v42  ;;  %v2286_v6 = vpop.f32.mrb[14].mxu0  ;;  %v2366_v19 = vpop.f32.mrb[14].mxu1 }
 0x12e   :  { %v2287_v40 = vpop.f32.mrb[15].mxu0  ;;  %v2367_v11 = vpop.f32.mrb[15].mxu1 }
 0x12f   :  { %v4087_v33 = vadd.f32 %v2365_v20, %v697_v39  ;;  %v2288_v41 = vadd.f32 %v2287_v40, %v2286_v6  ;;  %v2368_v2 = vadd.f32 %v2367_v11, %v2366_v19 }
 0x131   :  { %v712_v23 = vadd.f32 %v2288_v41, %v4066_v42  ;;  %v2289_v4 = vpop.f32.mrb[16].mxu0  ;;  %v2369_v21 = vpop.f32.mrb[16].mxu1 }
 0x132   :  { %v2290_v36 = vpop.f32.mrb[17].mxu0  ;;  %v2370_v9 = vpop.f32.mrb[17].mxu1 }
 0x133   :  { %v4090_v30 = vadd.f32 %v2368_v2, %v712_v23  ;;  %v2291_v16 = vadd.f32 %v2290_v36, %v2289_v4  ;;  %v2371_v55 = vadd.f32 %v2370_v9, %v2369_v21 }
 0x135   :  { %v727_v12 = vadd.f32 %v2291_v16, %v4066_v42  ;;  %v2292_v45 = vpop.f32.mrb[18].mxu0  ;;  %v2372_v61 = vpop.f32.mrb[18].mxu1 }
 0x136   :  { %v2293_v46 = vpop.f32.mrb[19].mxu0  ;;  %v2373_v60 = vpop.f32.mrb[19].mxu1 }
 0x137   :  { %v4093_v49 = vadd.f32 %v2371_v55, %v727_v12  ;;  %v2294_v58 = vadd.f32 %v2293_v46, %v2292_v45  ;;  %v2374_v63 = vadd.f32 %v2373_v60, %v2372_v61 }
 0x139   :  { %v742_v27 = vadd.f32 %v2294_v58, %v4066_v42  ;;  %v2295_v5 = vpop.f32.mrb[20].mxu0  ;;  %v2375_v47 = vpop.f32.mrb[20].mxu1 }
 0x13a   :  { %v2296_v57 = vpop.f32.mrb[21].mxu0  ;;  %v2376_v17 = vpop.f32.mrb[21].mxu1 }
 0x13b   :  { %v4096_v32 = vadd.f32 %v2374_v63, %v742_v27  ;;  %v2297_v15 = vadd.f32 %v2296_v57, %v2295_v5  ;;  %v2377_v43 = vadd.f32 %v2376_v17, %v2375_v47 }
 0x13d   :  { %v757_v50 = vadd.f32 %v2297_v15, %v4066_v42  ;;  %v2298_v35 = vpop.f32.mrb[22].mxu0  ;;  %v2378_v22 = vpop.f32.mrb[22].mxu1 }
 0x13e   :  { %v2299_v44 = vpop.f32.mrb[23].mxu0  ;;  %v2379_v0 = vpop.f32.mrb[23].mxu1 }
 0x13f   :  { %v4099_v26 = vadd.f32 %v2377_v43, %v757_v50  ;;  %v2300_v62 = vadd.f32 %v2299_v44, %v2298_v35  ;;  %v2380_v7 = vadd.f32 %v2379_v0, %v2378_v22 }
 0x141   :  { %v772_v48 = vadd.f32 %v2300_v62, %v4066_v42  ;;  %v2301_v37 = vpop.f32.mrb[24].mxu0  ;;  %v2381_v28 = vpop.f32.mrb[24].mxu1 }
 0x142   :  { %v2302_v14 = vpop.f32.mrb[25].mxu0  ;;  %v2382_v13 = vpop.f32.mrb[25].mxu1 }
 0x143   :  { %v4102_v29 = vadd.f32 %v2380_v7, %v772_v48  ;;  %v2303_v53 = vadd.f32 %v2302_v14, %v2301_v37  ;;  %v2383_v10 = vadd.f32 %v2382_v13, %v2381_v28 }
 0x145   :  { %v787_v52 = vadd.f32 %v2303_v53, %v4066_v42  ;;  %v2304_v31 = vpop.f32.mrb[26].mxu0  ;;  %v2384_v38 = vpop.f32.mrb[26].mxu1 }
 0x146   :  { %v2305_v54 = vpop.f32.mrb[27].mxu0  ;;  %v2385_v3 = vpop.f32.mrb[27].mxu1 }
 0x147   :  { %v4105_v25 = vadd.f32 %v2383_v10, %v787_v52  ;;  %v2306_v8 = vadd.f32 %v2305_v54, %v2304_v31  ;;  %v2386_v59 = vadd.f32 %v2385_v3, %v2384_v38 }
 0x149   :  { %v802_v20 = vadd.f32 %v2306_v8, %v4066_v42  ;;  %v2307_v39 = vpop.f32.mrb[28].mxu0  ;;  %v2387_v40 = vpop.f32.mrb[28].mxu1 }
 0x14a   :  { %v2308_v6 = vpop.f32.mrb[29].mxu0  ;;  %v2388_v11 = vpop.f32.mrb[29].mxu1 }
 0x14b   :  { %v2309_v19 = vadd.f32 %v2308_v6, %v2307_v39  ;;  %v4108_v41 = vadd.f32 %v2386_v59, %v802_v20  ;;  %v2389_v2 = vadd.f32 %v2388_v11, %v2387_v40 }
 0x14d   :  { %v817_v23 = vadd.f32 %v2309_v19, %v4066_v42  ;;  %v2310_v4 = vpop.f32.mrb[30].mxu0  ;;  %v2390_v21 = vpop.f32.mrb[30].mxu1 }
 0x14e   :  { %v2311_v36 = vpop.f32.mrb[31].mxu0  ;;  %v2391_v55 = vpop.f32.mrb[31].mxu1 }
 0x14f   :  { %v2312_v16 = vadd.f32 %v2311_v36, %v2310_v4  ;;  %v4111_v9 = vadd.f32 %v2389_v2, %v817_v23  ;;  %v2392_v12 = vadd.f32 %v2391_v55, %v2390_v21 }
 0x151   :  { %v832_v45 = vadd.f32 %v2312_v16, %v4066_v42  ;;  %v2425_v46 = vpop.f32.mrb[32].mxu0  ;;  %v2505_v63 = vpop.f32.mrb[32].mxu1 }
 0x152   :  { %v2426_v61 = vpop.f32.mrb[33].mxu0  ;;  %v2506_v27 = vpop.f32.mrb[33].mxu1 }
 0x153   :  { %v2427_v58 = vadd.f32 %v2426_v61, %v2425_v46  ;;  %v4114_v60 = vadd.f32 %v2392_v12, %v832_v45  ;;  %v2507_v47 = vadd.f32 %v2506_v27, %v2505_v63 }
 0x155   :  { %v1307_v5 = vadd.f32 %v2427_v58, %v4069_v51  ;;  %v2428_v57 = vpop.f32.mrb[34].mxu0  ;;  %v2508_v50 = vpop.f32.mrb[34].mxu1 }
 0x156   :  { %v2429_v15 = vpop.f32.mrb[35].mxu0  ;;  %v2509_v35 = vpop.f32.mrb[35].mxu1 }
 0x157   :  { %v2430_v17 = vadd.f32 %v2429_v15, %v2428_v57  ;;  %v4117_v43 = vadd.f32 %v2507_v47, %v1307_v5  ;;  %v2510_v22 = vadd.f32 %v2509_v35, %v2508_v50 }
 0x159   :  { %v1316_v44 = vadd.f32 %v2430_v17, %v4072_v18  ;;  %v2431_v42 = vpop.f32.mrb[36].mxu0 }
 0x15a   :  { %v2432_v62 = vpop.f32.mrb[37].mxu0 }
 0x15b   :  { %v2433_v0 = vadd.f32 %v2432_v62, %v2431_v42  ;;  %v4120_v7 = vadd.f32 %v2510_v22, %v1316_v44  ;;  %v2511_v48 = vpop.f32.mrb[36].mxu1 }
 0x15c   :  { %v2512_v37 = vpop.f32.mrb[37].mxu1 }
 0x15d   :  { %v1325_v51 = vadd.f32 %v2433_v0, %v4075_v56  ;;  %v2434_v14 = vpop.f32.mrb[38].mxu0  ;;  %v2513_v28 = vadd.f32 %v2512_v37, %v2511_v48 }
 0x15e   :  { %v2435_v53 = vpop.f32.mrb[39].mxu0 }
 0x15f   :  { %v2436_v13 = vadd.f32 %v2435_v53, %v2434_v14  ;;  %v4123_v10 = vadd.f32 %v2513_v28, %v1325_v51  ;;  %v2514_v52 = vpop.f32.mrb[38].mxu1 }
 0x160   :  { %v2515_v31 = vpop.f32.mrb[39].mxu1 }
 0x161   :  { %v1334_v18 = vadd.f32 %v2436_v13, %v4078_v24  ;;  %v2437_v54 = vpop.f32.mrb[40].mxu0  ;;  %v2516_v38 = vadd.f32 %v2515_v31, %v2514_v52 }
 0x162   :  { %v2438_v8 = vpop.f32.mrb[41].mxu0 }
 0x163   :  { %v2439_v3 = vadd.f32 %v2438_v8, %v2437_v54  ;;  %v4126_v59 = vadd.f32 %v2516_v38, %v1334_v18  ;;  %v2517_v20 = vpop.f32.mrb[40].mxu1 }
 0x164   :  { %v2518_v39 = vpop.f32.mrb[41].mxu1 }
 0x165   :  { %v1343_v56 = vadd.f32 %v2439_v3, %v4081_v1  ;;  %v2440_v6 = vpop.f32.mrb[42].mxu0  ;;  %v2519_v40 = vadd.f32 %v2518_v39, %v2517_v20 }
 0x166   :  { %v2441_v19 = vpop.f32.mrb[43].mxu0 }
 0x167   :  { %v2442_v11 = vadd.f32 %v2441_v19, %v2440_v6  ;;  %v4129_v2 = vadd.f32 %v2519_v40, %v1343_v56  ;;  %v2520_v23 = vpop.f32.mrb[42].mxu1 }
 0x168   :  { %v2521_v4 = vpop.f32.mrb[43].mxu1 }
 0x169   :  { %v1352_v24 = vadd.f32 %v2442_v11, %v4084_v34  ;;  %v2443_v36 = vpop.f32.mrb[44].mxu0  ;;  %v2522_v21 = vadd.f32 %v2521_v4, %v2520_v23 }
 0x16a   :  { %v2444_v16 = vpop.f32.mrb[45].mxu0 }
 0x16b   :  { %v2445_v55 = vadd.f32 %v2444_v16, %v2443_v36  ;;  %v4132_v12 = vadd.f32 %v2522_v21, %v1352_v24  ;;  %v2523_v45 = vpop.f32.mrb[44].mxu1 }
 0x16c   :  { %v2524_v46 = vpop.f32.mrb[45].mxu1 }
 0x16d   :  { %v1361_v1 = vadd.f32 %v2445_v55, %v4087_v33  ;;  %v2446_v61 = vpop.f32.mrb[46].mxu0  ;;  %v2525_v58 = vadd.f32 %v2524_v46, %v2523_v45 }
 0x16e   :  { %v2447_v63 = vpop.f32.mrb[47].mxu0 }
 0x16f   :  { %v2448_v27 = vadd.f32 %v2447_v63, %v2446_v61  ;;  %v4135_v5 = vadd.f32 %v2525_v58, %v1361_v1  ;;  %v2526_v57 = vpop.f32.mrb[46].mxu1 }
 0x170   :  { %v2527_v47 = vpop.f32.mrb[47].mxu1 }
 0x171   :  { %v1370_v34 = vadd.f32 %v2448_v27, %v4090_v30  ;;  %v2449_v15 = vpop.f32.mrb[48].mxu0  ;;  %v2528_v17 = vadd.f32 %v2527_v47, %v2526_v57 }
 0x172   :  { %v2450_v50 = vpop.f32.mrb[49].mxu0 }
 0x173   :  { %v2451_v35 = vadd.f32 %v2450_v50, %v2449_v15  ;;  %v4138_v44 = vadd.f32 %v2528_v17, %v1370_v34  ;;  %v2529_v42 = vpop.f32.mrb[48].mxu1 }
 0x174   :  { %v2530_v22 = vpop.f32.mrb[49].mxu1 }
 0x175   :  { %v1379_v33 = vadd.f32 %v2451_v35, %v4093_v49  ;;  %v2452_v62 = vpop.f32.mrb[50].mxu0  ;;  %v2531_v0 = vadd.f32 %v2530_v22, %v2529_v42 }
 0x176   :  { %v2453_v48 = vpop.f32.mrb[51].mxu0 }
 0x177   :  { %v2454_v37 = vadd.f32 %v2453_v48, %v2452_v62  ;;  %v4141_v51 = vadd.f32 %v2531_v0, %v1379_v33  ;;  %v2532_v14 = vpop.f32.mrb[50].mxu1 }
 0x178   :  { %v2533_v28 = vpop.f32.mrb[51].mxu1 }
 0x179   :  { %v1388_v30 = vadd.f32 %v2454_v37, %v4096_v32  ;;  %v2455_v53 = vpop.f32.mrb[52].mxu0  ;;  %v2534_v13 = vadd.f32 %v2533_v28, %v2532_v14 }
 0x17a   :  { %v2456_v52 = vpop.f32.mrb[53].mxu0 }
 0x17b   :  { %v2457_v31 = vadd.f32 %v2456_v52, %v2455_v53  ;;  %v4144_v18 = vadd.f32 %v2534_v13, %v1388_v30  ;;  %v2535_v54 = vpop.f32.mrb[52].mxu1 }
 0x17c   :  { %v2536_v38 = vpop.f32.mrb[53].mxu1 }
 0x17d   :  { %v1397_v49 = vadd.f32 %v2457_v31, %v4099_v26  ;;  %v2458_v8 = vpop.f32.mrb[54].mxu0  ;;  %v2537_v3 = vadd.f32 %v2536_v38, %v2535_v54 }
 0x17e   :  { %v2459_v20 = vpop.f32.mrb[55].mxu0 }
 0x17f   :  { %v2460_v39 = vadd.f32 %v2459_v20, %v2458_v8  ;;  %v4147_v56 = vadd.f32 %v2537_v3, %v1397_v49  ;;  %v2538_v6 = vpop.f32.mrb[54].mxu1 }
 0x180   :  { %v2539_v40 = vpop.f32.mrb[55].mxu1 }
 0x181   :  { %v1406_v32 = vadd.f32 %v2460_v39, %v4102_v29  ;;  %v2461_v19 = vpop.f32.mrb[56].mxu0  ;;  %v2540_v11 = vadd.f32 %v2539_v40, %v2538_v6 }
 0x182   :  { %v2462_v23 = vpop.f32.mrb[57].mxu0 }
 0x183   :  { %v2463_v4 = vadd.f32 %v2462_v23, %v2461_v19  ;;  %v4150_v24 = vadd.f32 %v2540_v11, %v1406_v32  ;;  %v2541_v36 = vpop.f32.mrb[56].mxu1 }
 0x184   :  { %v2542_v21 = vpop.f32.mrb[57].mxu1 }
 0x185   :  { %v1415_v26 = vadd.f32 %v2463_v4, %v4105_v25  ;;  %v2464_v16 = vpop.f32.mrb[58].mxu0  ;;  %v2543_v55 = vadd.f32 %v2542_v21, %v2541_v36 }
 0x186   :  { %v2465_v45 = vpop.f32.mrb[59].mxu0 }
 0x187   :  { %v2466_v46 = vadd.f32 %v2465_v45, %v2464_v16  ;;  %v4153_v1 = vadd.f32 %v2543_v55, %v1415_v26  ;;  %v2544_v61 = vpop.f32.mrb[58].mxu1 }
 0x188   :  { %v2545_v58 = vpop.f32.mrb[59].mxu1 }
 0x189   :  { %v1424_v29 = vadd.f32 %v2466_v46, %v4108_v41  ;;  %v2467_v63 = vpop.f32.mrb[60].mxu0  ;;  %v2546_v27 = vadd.f32 %v2545_v58, %v2544_v61 }
 0x18a   :  { %v2468_v57 = vpop.f32.mrb[61].mxu0 }
 0x18b   :  { %v2469_v47 = vadd.f32 %v2468_v57, %v2467_v63  ;;  %v4156_v34 = vadd.f32 %v2546_v27, %v1424_v29  ;;  %v2547_v15 = vpop.f32.mrb[60].mxu1 }
 0x18c   :  { %v2548_v17 = vpop.f32.mrb[61].mxu1 }
 0x18d   :  { %v1433_v25 = vadd.f32 %v2469_v47, %v4111_v9  ;;  %v2470_v50 = vpop.f32.mrb[62].mxu0  ;;  %v2549_v35 = vadd.f32 %v2548_v17, %v2547_v15 }
 0x18e   :  { %v2471_v42 = vpop.f32.mrb[63].mxu0 }
 0x18f   :  { %v2472_v22 = vadd.f32 %v2471_v42, %v2470_v50  ;;  %v4159_v33 = vadd.f32 %v2549_v35, %v1433_v25  ;;  %v2550_v62 = vpop.f32.mrb[62].mxu1 }
 0x190   :  { %v2551_v0 = vpop.f32.mrb[63].mxu1 }
 0x191   :  { %v1442_v41 = vadd.f32 %v2472_v22, %v4114_v60  ;;  %v2585_v48 = vpop.f32.mrb[64].mxu0  ;;  %v2552_v37 = vadd.f32 %v2551_v0, %v2550_v62 }
 0x192   :  { %v2586_v14 = vpop.f32.mrb[65].mxu0 }
 0x193   :  { %v2587_v28 = vadd.f32 %v2586_v14, %v2585_v48  ;;  %v4162_v30 = vadd.f32 %v2552_v37, %v1442_v41  ;;  %v2665_v53 = vpop.f32.mrb[64].mxu1 }
 0x194   :  { %v2666_v13 = vpop.f32.mrb[65].mxu1 }
 0x195   :  { %v1883_v9 = vadd.f32 %v2587_v28, %v4117_v43  ;;  %v2588_v52 = vpop.f32.mrb[66].mxu0  ;;  %v2667_v31 = vadd.f32 %v2666_v13, %v2665_v53 }
 0x196   :  { %v2589_v54 = vpop.f32.mrb[67].mxu0 }
 0x197   :  { %v2590_v38 = vadd.f32 %v2589_v54, %v2588_v52  ;;  %v2092_v49 = vadd.f32 %v2667_v31, %v1883_v9  ;;  %v2668_v8 = vpop.f32.mrb[66].mxu1 }
 0x198   :  { %v2669_v3 = vpop.f32.mrb[67].mxu1 }
 0x199   :  { %v1890_v60 = vadd.f32 %v2590_v38, %v4120_v7  ;;  %v2591_v20 = vpop.f32.mrb[68].mxu0  ;;  %2201 = vst.msk [vmem:[#allocation3] sm:$0xff] %vm2200_vm0, %v2092_v49  ;;  %v2670_v39 = vadd.f32 %v2669_v3, %v2668_v8 }
 0x19a   :  { %v2592_v6 = vpop.f32.mrb[69].mxu0 }
 0x19b   :  { %v2593_v40 = vadd.f32 %v2592_v6, %v2591_v20  ;;  %v2099_v32 = vadd.f32 %v2670_v39, %v1890_v60  ;;  %v2671_v19 = vpop.f32.mrb[68].mxu1 }
 0x19c   :  { %v2672_v11 = vpop.f32.mrb[69].mxu1 }
 0x19d   :  { %v1897_v43 = vadd.f32 %v2593_v40, %v4123_v10  ;;  %v2594_v23 = vpop.f32.mrb[70].mxu0  ;;  %2202 = vst.msk [vmem:[#allocation3 + $0x8] sm:$0xff] %vm2200_vm0, %v2099_v32  ;;  %v2673_v4 = vadd.f32 %v2672_v11, %v2671_v19 }
 0x19e   :  { %v2595_v36 = vpop.f32.mrb[71].mxu0 }
 0x19f   :  { %v2596_v21 = vadd.f32 %v2595_v36, %v2594_v23  ;;  %v2106_v26 = vadd.f32 %v2673_v4, %v1897_v43  ;;  %v2674_v16 = vpop.f32.mrb[70].mxu1 }
 0x1a0   :  { %v2675_v7 = vpop.f32.mrb[71].mxu1 }
 0x1a1   :  { %v1904_v55 = vadd.f32 %v2596_v21, %v4126_v59  ;;  %v2597_v45 = vpop.f32.mrb[72].mxu0  ;;  %2203 = vst.msk [vmem:[#allocation3 + $0x10] sm:$0xff] %vm2200_vm0, %v2106_v26  ;;  %v2676_v46 = vadd.f32 %v2675_v7, %v2674_v16 }
 0x1a2   :  { %v2598_v61 = vpop.f32.mrb[73].mxu0 }
 0x1a3   :  { %v2599_v58 = vadd.f32 %v2598_v61, %v2597_v45  ;;  %v2113_v29 = vadd.f32 %v2676_v46, %v1904_v55  ;;  %v2677_v63 = vpop.f32.mrb[72].mxu1 }
 0x1a4   :  { %v2678_v10 = vpop.f32.mrb[73].mxu1 }
 0x1a5   :  { %v1911_v27 = vadd.f32 %v2599_v58, %v4129_v2  ;;  %v2600_v57 = vpop.f32.mrb[74].mxu0  ;;  %2204 = vst.msk [vmem:[#allocation3 + $0x18] sm:$0xff] %vm2200_vm0, %v2113_v29  ;;  %v2679_v47 = vadd.f32 %v2678_v10, %v2677_v63 }
 0x1a6   :  { %v2601_v15 = vpop.f32.mrb[75].mxu0 }
 0x1a7   :  { %v2602_v17 = vadd.f32 %v2601_v15, %v2600_v57  ;;  %v2120_v25 = vadd.f32 %v2679_v47, %v1911_v27  ;;  %v2680_v50 = vpop.f32.mrb[74].mxu1 }
 0x1a8   :  { %v2681_v59 = vpop.f32.mrb[75].mxu1 }
 0x1a9   :  { %v1918_v35 = vadd.f32 %v2602_v17, %v4132_v12  ;;  %v2603_v42 = vpop.f32.mrb[76].mxu0  ;;  %2205 = vst.msk [vmem:[#allocation3 + $0x20] sm:$0xff] %vm2200_vm0, %v2120_v25  ;;  %v2682_v22 = vadd.f32 %v2681_v59, %v2680_v50 }
 0x1aa   :  { %v2604_v62 = vpop.f32.mrb[77].mxu0 }
 0x1ab   :  { %v2605_v0 = vadd.f32 %v2604_v62, %v2603_v42  ;;  %v2127_v41 = vadd.f32 %v2682_v22, %v1918_v35  ;;  %v2683_v48 = vpop.f32.mrb[76].mxu1 }
 0x1ac   :  { %v2684_v2 = vpop.f32.mrb[77].mxu1 }
 0x1ad   :  { %v1925_v37 = vadd.f32 %v2605_v0, %v4135_v5  ;;  %v2606_v14 = vpop.f32.mrb[78].mxu0  ;;  %2206 = vst.msk [vmem:[#allocation3 + $0x28] sm:$0xff] %vm2200_vm0, %v2127_v41  ;;  %v2685_v28 = vadd.f32 %v2684_v2, %v2683_v48 }
 0x1ae   :  { %v2607_v53 = vpop.f32.mrb[79].mxu0 }
 0x1af   :  { %v2608_v13 = vadd.f32 %v2607_v53, %v2606_v14  ;;  %v2134_v9 = vadd.f32 %v2685_v28, %v1925_v37  ;;  %v2686_v52 = vpop.f32.mrb[78].mxu1 }
 0x1b0   :  { %v2687_v12 = vpop.f32.mrb[79].mxu1 }
 0x1b1   :  { %v1932_v31 = vadd.f32 %v2608_v13, %v4138_v44  ;;  %v2609_v54 = vpop.f32.mrb[80].mxu0  ;;  %2207 = vst.msk [vmem:[#allocation3 + $0x30] sm:$0xff] %vm2200_vm0, %v2134_v9  ;;  %v2688_v38 = vadd.f32 %v2687_v12, %v2686_v52 }
 0x1b2   :  { %v2610_v49 = vpop.f32.mrb[81].mxu0 }
 0x1b3   :  { %v2611_v8 = vadd.f32 %v2610_v49, %v2609_v54  ;;  %v2141_v3 = vadd.f32 %v2688_v38, %v1932_v31  ;;  %v2689_v60 = vpop.f32.mrb[80].mxu1 }
 0x1b4   :  { %v2690_v5 = vpop.f32.mrb[81].mxu1 }
 0x1b5   :  { %v1939_v20 = vadd.f32 %v2611_v8, %v4141_v51  ;;  %v2612_v39 = vpop.f32.mrb[82].mxu0  ;;  %2208 = vst.msk [vmem:[#allocation3 + $0x38] sm:$0xff] %vm2200_vm0, %v2141_v3  ;;  %v2691_v6 = vadd.f32 %v2690_v5, %v2689_v60 }
 0x1b6   :  { %v2613_v40 = vpop.f32.mrb[83].mxu0 }
 0x1b7   :  { %v2614_v32 = vadd.f32 %v2613_v40, %v2612_v39  ;;  %v2148_v19 = vadd.f32 %v2691_v6, %v1939_v20  ;;  %v2692_v11 = vpop.f32.mrb[82].mxu1 }
 0x1b8   :  { %v2693_v44 = vpop.f32.mrb[83].mxu1 }
 0x1b9   :  { %v1946_v43 = vadd.f32 %v2614_v32, %v4144_v18  ;;  %v2615_v23 = vpop.f32.mrb[84].mxu0  ;;  %2209 = vst.msk [vmem:[#allocation3 + $0x40] sm:$0xff] %vm2200_vm0, %v2148_v19  ;;  %v2694_v4 = vadd.f32 %v2693_v44, %v2692_v11 }
 0x1ba   :  { %v2616_v36 = vpop.f32.mrb[85].mxu0 }
 0x1bb   :  { %v2617_v21 = vadd.f32 %v2616_v36, %v2615_v23  ;;  %v2155_v26 = vadd.f32 %v2694_v4, %v1946_v43  ;;  %v2695_v16 = vpop.f32.mrb[84].mxu1 }
 0x1bc   :  { %v2696_v51 = vpop.f32.mrb[85].mxu1 }
 0x1bd   :  { %v1953_v7 = vadd.f32 %v2617_v21, %v4147_v56  ;;  %v2618_v55 = vpop.f32.mrb[86].mxu0  ;;  %2210 = vst.msk [vmem:[#allocation3 + $0x48] sm:$0xff] %vm2200_vm0, %v2155_v26  ;;  %v2697_v45 = vadd.f32 %v2696_v51, %v2695_v16 }
 0x1be   :  { %v2619_v46 = vpop.f32.mrb[87].mxu0 }
 0x1bf   :  { %v2620_v61 = vadd.f32 %v2619_v46, %v2618_v55  ;;  %v2162_v58 = vadd.f32 %v2697_v45, %v1953_v7  ;;  %v2698_v29 = vpop.f32.mrb[86].mxu1 }
 0x1c0   :  { %v2699_v18 = vpop.f32.mrb[87].mxu1 }
 0x1c1   :  { %v1960_v63 = vadd.f32 %v2620_v61, %v4150_v24  ;;  %v2621_v10 = vpop.f32.mrb[88].mxu0  ;;  %2211 = vst.msk [vmem:[#allocation3 + $0x50] sm:$0xff] %vm2200_vm0, %v2162_v58  ;;  %v2700_v27 = vadd.f32 %v2699_v18, %v2698_v29 }
 0x1c2   :  { %v2622_v57 = vpop.f32.mrb[89].mxu0 }
 0x1c3   :  { %v2623_v47 = vadd.f32 %v2622_v57, %v2621_v10  ;;  %v2169_v15 = vadd.f32 %v2700_v27, %v1960_v63  ;;  %v2701_v17 = vpop.f32.mrb[88].mxu1 }
 0x1c4   :  { %v2702_v56 = vpop.f32.mrb[89].mxu1 }
 0x1c5   :  { %v1967_v25 = vadd.f32 %v2623_v47, %v4153_v1  ;;  %v2624_v50 = vpop.f32.mrb[90].mxu0  ;;  %2212 = vst.msk [vmem:[#allocation3 + $0x58] sm:$0xff] %vm2200_vm0, %v2169_v15  ;;  %v2703_v59 = vadd.f32 %v2702_v56, %v2701_v17 }
 0x1c6   :  { %v2625_v35 = vpop.f32.mrb[91].mxu0 }
 0x1c7   :  { %v2626_v42 = vadd.f32 %v2625_v35, %v2624_v50  ;;  %v2176_v22 = vadd.f32 %v2703_v59, %v1967_v25  ;;  %v2704_v62 = vpop.f32.mrb[90].mxu1 }
 0x1c8   :  { %v2705_v24 = vpop.f32.mrb[91].mxu1 }
 0x1c9   :  { %v1974_v0 = vadd.f32 %v2626_v42, %v4156_v34  ;;  %v2627_v41 = vpop.f32.mrb[92].mxu0  ;;  %2213 = vst.msk [vmem:[#allocation3 + $0x60] sm:$0xff] %vm2200_vm0, %v2176_v22  ;;  %v2706_v48 = vadd.f32 %v2705_v24, %v2704_v62 }
 0x1ca   :  { %v2628_v2 = vpop.f32.mrb[93].mxu0 }
 0x1cb   :  { %v2629_v37 = vadd.f32 %v2628_v2, %v2627_v41  ;;  %v2183_v14 = vadd.f32 %v2706_v48, %v1974_v0  ;;  %v2707_v28 = vpop.f32.mrb[92].mxu1 }
 0x1cc   :  { %v2708_v1 = vpop.f32.mrb[93].mxu1 }
 0x1cd   :  { %v1981_v53 = vadd.f32 %v2629_v37, %v4159_v33  ;;  %v2630_v13 = vpop.f32.mrb[94].mxu0  ;;  %2214 = vst.msk [vmem:[#allocation3 + $0x68] sm:$0xff] %vm2200_vm0, %v2183_v14  ;;  %v2709_v9 = vadd.f32 %v2708_v1, %v2707_v28 }
 0x1ce   :  { %v2631_v52 = vpop.f32.mrb[95].mxu0 }
 0x1cf   :  { %v2632_v12 = vadd.f32 %v2631_v52, %v2630_v13  ;;  %v2190_v31 = vadd.f32 %v2709_v9, %v1981_v53  ;;  %v2710_v54 = vpop.f32.mrb[94].mxu1 }
 0x1d0   :  { %v2711_v34 = vpop.f32.mrb[95].mxu1 }
 0x1d1   :  { %v1988_v38 = vadd.f32 %v2632_v12, %v4162_v30  ;;  %2215 = vst.msk [vmem:[#allocation3 + $0x70] sm:$0xff] %vm2200_vm0, %v2190_v31  ;;  %v2712_v49 = vadd.f32 %v2711_v34, %v2710_v54 }
 0x1d3   :  { %v2197_v8 = vadd.f32 %v2712_v49, %v1988_v38 }
 0x1d5   :  { %2216 = vst.msk [vmem:[#allocation3 + $0x78] sm:$0xff] %vm2200_vm0, %v2197_v8 }
 0x1d6   :  { %2221 = vsyncadd [#allocation4], 2016  ;;  %s2997_s2 = smov [#allocation3]  }
 0x1d7   :  { %s2222_s30 = sshll.u32 %s2997_s2, 4  ;;  %s2223_s30 = int_to_ptr.vmem [resolvable:$true] %s2222_s30 }
 0x1d8   :  { %s2973_s4 = scalar_lea.vmem %s2223_s30, 32  ;;  %s2977_s5 = scalar_lea.vmem %s2223_s30, 2048 }
 0x1d9   :  { %p2974_p0 = scmp.ne.s32.totalorder %s2223_s30, %s2973_s4  ;;  %p2978_p1 = scmp.lt.s32.totalorder %s2223_s30, %s2223_s30 }
 0x1da   :  { %p2979_p2 = scmp.lt.s32.totalorder %s2977_s5, %s2973_s4 }
 0x1dc   :  { %p2980_p3 = por %p2979_p2, %p2978_p1 }
 0x1de   :  { %p2981_p4 = pnand %p2980_p3, %p2974_p0 }
 0x1e0   :  { %2984 = shalt.err (!%p2981_p4)
}
 0x1e1   :  { %s2985_s8 = scalar_lea.hbm %s4211_s3, 32 }
 0x1e2   :  { %p2986_p5 = scmp.ne.s32.totalorder %s4211_s3, %s2985_s8  ;;  %p2989_p6 = scmp.lt.u32.totalorder %s2985_s8, %s4211_s3 }
 0x1e4   :  { %p2991_p7 = pnand %p2989_p6, %p2986_p5 }
 0x1e6   :  { %2994 = shalt.err (!%p2991_p7)
}
 0x1e7   :  { %s2998_s13 = smov 32   ;;  %s2999_s14 = smov 2  }
 0x1e8   :  { %2228 = dma.vmem_to_hbm [thread:$0]  %s2223_s30, 32, %s4211_s3, [#allocation4], %s2998_s13, %s2998_s13, %s2999_s14  }
 0x1e9   :  { %2995 = dma.done.wait [#allocation4], 2048  }
 0x1ea   :  { %2996 = vsyncadd [#allocation4], 4294965248 }
 0x1eb   :  { %2232 = vsyncpa [#allocation4], 1 }

</bundles_post_ra>
